<compile_context>
chip_gen: v7x
topology: tpu7x:2x2x1
jax: 0.10.0
libtpu: 0.0.40
codegen_flags: <defaults>
</compile_context>

<pallas_src>
import functools

import numpy as np
import jax
import jax.numpy as jnp
from jax import lax
from jax.experimental import pallas as pl
from jax.experimental.pallas import tpu as pltpu


def _r8(c):
    """Round a row count up to a full 8-sublane tile."""
    return ((c + 7) // 8) * 8


def _bilinear_matrix(n_in, n_out):
    """Interpolation matrix for nn.Upsample(mode='bilinear', align_corners=True)."""
    A = np.zeros((n_out, n_in), dtype=np.float32)
    if n_out == 1 or n_in == 1:
        A[:, 0] = 1.0
        return A
    scale = (n_in - 1) / (n_out - 1)
    for i in range(n_out):
        src = i * scale
        i0 = min(int(np.floor(src)), n_in - 1)
        i1 = min(i0 + 1, n_in - 1)
        w1 = src - i0
        A[i, i0] += 1.0 - w1
        A[i, i1] += w1
    return A


def _tap_masks(H2, W2):
    """Per-tap validity masks (zero where a 3x3 SAME tap falls outside the image)."""
    m = np.zeros((9, H2 * W2), dtype=np.float32)
    yy, xx = np.meshgrid(np.arange(H2), np.arange(W2), indexing="ij")
    t = 0
    for dy in (-1, 0, 1):
        for dx in (-1, 0, 1):
            valid = (yy + dy >= 0) & (yy + dy < H2) & (xx + dx >= 0) & (xx + dx < W2)
            m[t] = valid.reshape(-1).astype(np.float32)
            t += 1
    return m


def _num_batch_blocks(N):
    """At most one grid step per TensorCore: 1 step on 1-TC parts (v5e/v6e),
    2 'parallel' steps on 2-TC parts (v7x / v4 megacore)."""
    try:
        kind = jax.devices()[0].device_kind.lower()
        n_tc = 2 if ("v7" in kind or "7x" in kind or "v4" in kind) else 1
    except Exception:   # unknown part: fall back to the portable 2-step grid
        n_tc = 2
    return 2 if (n_tc > 1 and N >= 2 and N % 2 == 0) else 1


def _conv3x3(sources, w_ref, b_ref, mask_ref, col_ref, *, W2, L):
    """3x3 SAME conv (+ folded-BN bias + ReLU) as ONE im2col matmul.

    `sources` is a list of (value (C, L), slab_rows P).  Each source's rolled
    taps are stored at an 8-aligned row offset of `col_ref`; the pad rows carry
    zero weight columns, so their pre-zeroed / stale-but-finite contents
    contribute nothing.
    """
    S = sum(P for _, P in sources)
    K = 9 * S
    t = 0
    for dy in (-1, 0, 1):
        for dx in (-1, 0, 1):
            off = dy * W2 + dx
            if off != 0:
                mt = mask_ref[t]                      # (8, L) pre-broadcast rows (load path)
            base = t * S
            for val, P in sources:
                C = val.shape[0]
                if off == 0:                          # centre tap: mask is all-ones
                    sh = val
                else:                                 # XLU lane roll + per-lane mask
                    sh = pltpu.roll(val, shift=(-off) % L, axis=1) * mt[:C]
                col_ref[base:base + C, :] = sh        # 8-aligned slab write (store slot)
                base += P
            t += 1
    acc = jnp.dot(w_ref[...], col_ref[0:K, :], preferred_element_type=jnp.float32)
    return jnp.maximum(acc + b_ref[...], 0.0)         # folded BN + ReLU


def _up_kernel(x1_ref, x2_ref, kup_ref, mask_ref,
               w1_ref, b1_ref, w2_ref, b2_ref,
               out_ref, col_ref, *, W2):
    BB, C1, _ = x1_ref.shape
    C2 = x2_ref.shape[1]
    HW2 = kup_ref.shape[1]
    L = BB * HW2

    # Pad rows of the im2col scratch must hold *finite* values: their weight
    # columns are zero, but 0 * NaN from uninitialised VMEM would still poison
    # the matmul.  One cheap store-slot pass (unconditional: each core on a
    # "parallel" grid owns its own scratch).
    col_ref[...] = jnp.zeros_like(col_ref)

    # 1) bilinear upsample (align_corners=True): one (C1,HW)@(HW,HW2) MXU matmul
    #    per image, lane-concatenated at 128-aligned (HW2-multiple) boundaries.
    ups = [jnp.dot(x1_ref[b], kup_ref[...], preferred_element_type=jnp.float32)
           for b in range(BB)]
    up = ups[0] if BB == 1 else jnp.concatenate(ups, axis=1)          # (C1, L)

    x2s = [x2_ref[b] for b in range(BB)]
    x2v = x2s[0] if BB == 1 else jnp.concatenate(x2s, axis=1)         # (C2, L)

    # 2) torch.cat([x2, x1_up], dim=1) is never materialised: both sources go
    #    directly into their own 8-aligned slabs of the im2col scratch.
    # TODO(synk): general F.pad offsets when x2 spatial != 2 * x1 spatial
    #             (diffX = diffY = 0 here; re-derive the tap masks if that changes).
    y1 = _conv3x3([(x2v, _r8(C2)), (up, _r8(C1))],
                  w1_ref, b1_ref, mask_ref, col_ref, W2=W2, L=L)      # (Cmid, L)
    y2 = _conv3x3([(y1, _r8(y1.shape[0]))],
                  w2_ref, b2_ref, mask_ref, col_ref, W2=W2, L=L)      # (Cout, L)

    # 3) lane-dense store, split per image on 128-aligned lane boundaries.
    for b in range(BB):
        out_ref[b] = y2[:, b * HW2:(b + 1) * HW2].astype(out_ref.dtype)


def up_forward(x1, x2, w1, s1, b1, w2, s2, b2):
    """Up.forward: bilinear-up(x1) -> pad -> cat([x2, x1]) -> DoubleConv (BN folded)."""
    N, C1, H, W = x1.shape
    N2, C2, H2, W2 = x2.shape
    assert N == N2 and H2 == 2 * H and W2 == 2 * W
    Cmid = w1.shape[-1]
    Cout = w2.shape[-1]
    HW, HW2 = H * W, H2 * W2

    NB = _num_batch_blocks(N)          # grid steps (<= 1 per TensorCore)
    BB = N // NB                       # images per grid step (stacked on lanes)
    L = BB * HW2

    # ---- host-side constants -------------------------------------------------
    # Fused bilinear operator (one matmul per image).
    # TODO(synk): at production sizes replace the dense kron operator (quadratic
    # in H*W, ~16 MiB at H=W=32 so it stops fitting v7x's 64 MiB VMEM) with a
    # separable / roll+lerp upsample, cast conv operands to bf16 (keep f32
    # accumulation), add row-strip spatial tiling and an explicit
    # vmem_limit_bytes.  Counterproductive at these toy shapes.
    A_h = _bilinear_matrix(H, H2)
    A_w = _bilinear_matrix(W, W2)
    kupT = jnp.asarray(np.kron(A_h, A_w).T)                           # (HW, HW2)

    # Tap-validity masks, tiled per image of the batch block and pre-broadcast
    # to 8 sublanes so the kernel never materialises broadcast_in_dim.
    CR = _r8(max(C1, C2, Cmid))
    masks = np.tile(_tap_masks(H2, W2), (1, BB))                      # (9, L)
    masks = jnp.asarray(np.ascontiguousarray(
        np.broadcast_to(masks[:, None, :], (9, CR, L))))              # (9, CR, L)

    # ---- weights: fold BN scale, split per source, pad each slab to 8 rows ----
    P2, P1, Pm = _r8(C2), _r8(C1), _r8(Cmid)
    S1, S2 = P2 + P1, Pm

    w1r = w1.reshape(9, C1 + C2, Cmid) * s1.reshape(1, 1, Cmid)       # BN scale folded
    w1p = jnp.concatenate(
        [jnp.pad(w1r[:, :C2, :], ((0, 0), (0, P2 - C2), (0, 0))),     # x2 slab
         jnp.pad(w1r[:, C2:, :], ((0, 0), (0, P1 - C1), (0, 0)))],    # upsampled-x1 slab
        axis=1)                                                       # (9, S1, Cmid)
    w1m = w1p.reshape(9 * S1, Cmid).T                                 # (Cmid, 9*S1)

    w2r = w2.reshape(9, Cmid, Cout) * s2.reshape(1, 1, Cout)          # BN scale folded
    w2m = jnp.pad(w2r, ((0, 0), (0, Pm - Cmid), (0, 0))).reshape(9 * S2, Cout).T

    b1r = b1.reshape(Cmid, 1)
    b2r = b2.reshape(Cout, 1)

    Kmax = max(9 * S1, 9 * S2)
    kernel = functools.partial(_up_kernel, W2=W2)

    out = pl.pallas_call(
        kernel,
        out_shape=jax.ShapeDtypeStruct((N, Cout, HW2), jnp.float32),
        grid=(NB,),
        in_specs=[
            pl.BlockSpec((BB, C1, HW), lambda n: (n, 0, 0)),          # x1 batch block
            pl.BlockSpec((BB, C2, HW2), lambda n: (n, 0, 0)),         # x2 batch block
            pl.BlockSpec((HW, HW2), lambda n: (0, 0)),                # bilinear operator
            pl.BlockSpec((9, CR, L), lambda n: (0, 0, 0)),            # tap masks (pre-broadcast)
            pl.BlockSpec((Cmid, 9 * S1), lambda n: (0, 0)),           # conv1 weights (BN folded)
            pl.BlockSpec((Cmid, 1), lambda n: (0, 0)),                # conv1 bias
            pl.BlockSpec((Cout, 9 * S2), lambda n: (0, 0)),           # conv2 weights (BN folded)
            pl.BlockSpec((Cout, 1), lambda n: (0, 0)),                # conv2 bias
        ],
        out_specs=pl.BlockSpec((BB, Cout, HW2), lambda n: (n, 0, 0)),
        scratch_shapes=[pltpu.VMEM((Kmax, L), jnp.float32)],          # aligned im2col scratch
        compiler_params=pltpu.CompilerParams(dimension_semantics=("parallel",)),
    )(x1.reshape(N, C1, HW), x2.reshape(N, C2, HW2),
      kupT, masks, w1m, b1r, w2m, b2r)

    return out.reshape(N, Cout, H2, W2)                               # NCHW, matching PyTorch


def reference(x1, x2, w1, s1, b1, w2, s2, b2):
    """Pure-JAX reference of the same forward pass (correctness check)."""
    N, C1, H, W = x1.shape
    _, C2, H2, W2 = x2.shape
    A_h = jnp.asarray(_bilinear_matrix(H, H2))
    A_w = jnp.asarray(_bilinear_matrix(W, W2))
    up = jnp.einsum("Hh,nchw,Ww->ncHW", A_h, x1, A_w)
    x = jnp.concatenate([x2, up], axis=1)             # cat([x2, x1_up], dim=1)
    x = jnp.transpose(x, (0, 2, 3, 1))                # NHWC
    dn = ("NHWC", "HWIO", "NHWC")
    y = lax.conv_general_dilated(x, w1, (1, 1), "SAME", dimension_numbers=dn)
    y = jnp.maximum(y * s1.reshape(1, 1, 1, -1) + b1.reshape(1, 1, 1, -1), 0.0)
    y = lax.conv_general_dilated(y, w2, (1, 1), "SAME", dimension_numbers=dn)
    y = jnp.maximum(y * s2.reshape(1, 1, 1, -1) + b2.reshape(1, 1, 1, -1), 0.0)
    return jnp.transpose(y, (0, 3, 1, 2))             # NCHW


if __name__ == "__main__":
    # Shapes implied by Up(in_channels=8, out_channels=4, bilinear=True, mode='cat'):
    # x1: (N, 4, 8, 8), x2: (N, 4, 16, 16); cat -> 8 channels; mid = 8 // 2 = 4.
    N, C1, H, W = 2, 4, 8, 8
    C2, H2, W2 = 4, 2 * H, 2 * W
    in_channels = C1 + C2
    out_channels = 4
    mid_channels = in_channels // 2

    key = jax.random.PRNGKey(0)
    ks = jax.random.split(key, 12)
    x1 = jax.random.normal(ks[0], (N, C1, H, W), jnp.float32)      # PyTorch NCHW
    x2 = jax.random.normal(ks[1], (N, C2, H2, W2), jnp.float32)    # PyTorch NCHW

    w1 = 0.2 * jax.random.normal(ks[2], (3, 3, in_channels, mid_channels), jnp.float32)
    w2 = 0.2 * jax.random.normal(ks[3], (3, 3, mid_channels, out_channels), jnp.float32)

    def bn_fold(kg, kb, km, kv, c):
        gamma = 1.0 + 0.1 * jax.random.normal(kg, (c,), jnp.float32)
        beta = 0.1 * jax.random.normal(kb, (c,), jnp.float32)
        mean = 0.1 * jax.random.normal(km, (c,), jnp.float32)
        var = jnp.abs(jax.random.normal(kv, (c,), jnp.float32)) * 0.5 + 0.5
        scale = gamma * lax.rsqrt(var + 1e-5)
        return scale, beta - mean * scale

    s1, b1 = bn_fold(ks[4], ks[5], ks[6], ks[7], mid_channels)
    s2, b2 = bn_fold(ks[8], ks[9], ks[10], ks[11], out_channels)

    out = up_forward(x1, x2, w1, s1, b1, w2, s2, b2)
    out = jax.block_until_ready(out)

    ref = reference(x1, x2, w1, s1, b1, w2, s2, b2)
    err = float(jnp.max(jnp.abs(out - ref)))
    assert out.shape == (N, out_channels, H2, W2), out.shape
    assert err < 1e-3, f"mismatch vs reference: {err}"
    print("KERNEL_OK")
</pallas_src>

<mosaic_0001>
module attributes {stable_mosaic.version = 11 : i64} {
  func.func @_up_kernel(%arg0: i32, %arg1: memref<2x4x64xf32, #tpu.memory_space<vmem>>, %arg2: memref<2x4x256xf32, #tpu.memory_space<vmem>>, %arg3: memref<64x256xf32, #tpu.memory_space<vmem>>, %arg4: memref<9x8x512xf32, #tpu.memory_space<vmem>>, %arg5: memref<4x144xf32, #tpu.memory_space<vmem>>, %arg6: memref<4x1xf32, #tpu.memory_space<vmem>>, %arg7: memref<4x72xf32, #tpu.memory_space<vmem>>, %arg8: memref<4x1xf32, #tpu.memory_space<vmem>>, %arg9: memref<2x4x256xf32, #tpu.memory_space<vmem>>, %arg10: memref<144x512xf32, #tpu.memory_space<vmem>>) attributes {dimension_semantics = [#tpu.dimension_semantics<parallel>], iteration_bounds = array<i64: 1>, scalar_prefetch = 0 : i64, scratch_operands = 1 : i64, tpu.core_type = #tpu.core_type<tc>, window_params = [{transform_indices = @transform_0, window_bounds = array<i64: 2, 4, 64>}, {transform_indices = @transform_1, window_bounds = array<i64: 2, 4, 256>}, {pipeline_mode = #tpu.pipeline_mode<synchronous>, transform_indices = @transform_2, window_bounds = array<i64: 64, 256>}, {pipeline_mode = #tpu.pipeline_mode<synchronous>, transform_indices = @transform_3, window_bounds = array<i64: 9, 8, 512>}, {pipeline_mode = #tpu.pipeline_mode<synchronous>, transform_indices = @transform_4, window_bounds = array<i64: 4, 144>}, {pipeline_mode = #tpu.pipeline_mode<synchronous>, transform_indices = @transform_5, window_bounds = array<i64: 4, 1>}, {pipeline_mode = #tpu.pipeline_mode<synchronous>, transform_indices = @transform_6, window_bounds = array<i64: 4, 72>}, {pipeline_mode = #tpu.pipeline_mode<synchronous>, transform_indices = @transform_7, window_bounds = array<i64: 4, 1>}, {transform_indices = @transform_8, window_bounds = array<i64: 2, 4, 256>}]} {
    %cst = arith.constant 0.000000e+00 : f32
    %0 = vector.broadcast %cst : f32 to vector<144x512xf32>
    %c0 = arith.constant 0 : index
    %c0_0 = arith.constant 0 : index
    %1 = vector.load %arg10[%c0, %c0_0] : memref<144x512xf32, #tpu.memory_space<vmem>>, vector<144x512xf32>
    tpu.vector_store %arg10[%c0, %c0_0], %0 {strides = array<i32>} : memref<144x512xf32, #tpu.memory_space<vmem>>, vector<144x512xf32>,
    %c0_1 = arith.constant 0 : index
    %c0_2 = arith.constant 0 : index
    %c0_3 = arith.constant 0 : index
    %2 = vector.load %arg1[%c0_1, %c0_2, %c0_3] : memref<2x4x64xf32, #tpu.memory_space<vmem>>, vector<1x4x64xf32>
    %3 = vector.shape_cast %2 : vector<1x4x64xf32> to vector<4x64xf32>
    %c0_4 = arith.constant 0 : index
    %c0_5 = arith.constant 0 : index
    %4 = vector.load %arg3[%c0_4, %c0_5] : memref<64x256xf32, #tpu.memory_space<vmem>>, vector<64x256xf32>
    %cst_6 = arith.constant dense<0.000000e+00> : vector<4x256xf32>
    %5 = tpu.matmul %3, %4, %cst_6 {dimension_numbers = #tpu.dot_dimension_numbers<[1], [0], [0], [1], [0, 0, 1, 1], [], []>} : vector<4x64xf32>, vector<64x256xf32>, vector<4x256xf32> -> vector<4x256xf32>
    %c1 = arith.constant 1 : index
    %c0_7 = arith.constant 0 : index
    %c0_8 = arith.constant 0 : index
    %6 = vector.load %arg1[%c1, %c0_7, %c0_8] : memref<2x4x64xf32, #tpu.memory_space<vmem>>, vector<1x4x64xf32>
    %7 = vector.shape_cast %6 : vector<1x4x64xf32> to vector<4x64xf32>
    %c0_9 = arith.constant 0 : index
    %c0_10 = arith.constant 0 : index
    %8 = vector.load %arg3[%c0_9, %c0_10] : memref<64x256xf32, #tpu.memory_space<vmem>>, vector<64x256xf32>
    %cst_11 = arith.constant dense<0.000000e+00> : vector<4x256xf32>
    %9 = tpu.matmul %7, %8, %cst_11 {dimension_numbers = #tpu.dot_dimension_numbers<[1], [0], [0], [1], [0, 0, 1, 1], [], []>} : vector<4x64xf32>, vector<64x256xf32>, vector<4x256xf32> -> vector<4x256xf32>
    %10 = tpu.concatenate %5, %9 in 1 : vector<4x256xf32>, vector<4x256xf32> -> vector<4x512xf32>
    %c0_12 = arith.constant 0 : index
    %c0_13 = arith.constant 0 : index
    %c0_14 = arith.constant 0 : index
    %11 = vector.load %arg2[%c0_12, %c0_13, %c0_14] : memref<2x4x256xf32, #tpu.memory_space<vmem>>, vector<1x4x256xf32>
    %12 = vector.shape_cast %11 : vector<1x4x256xf32> to vector<4x256xf32>
    %c1_15 = arith.constant 1 : index
    %c0_16 = arith.constant 0 : index
    %c0_17 = arith.constant 0 : index
    %13 = vector.load %arg2[%c1_15, %c0_16, %c0_17] : memref<2x4x256xf32, #tpu.memory_space<vmem>>, vector<1x4x256xf32>
    %14 = vector.shape_cast %13 : vector<1x4x256xf32> to vector<4x256xf32>
    %15 = tpu.concatenate %12, %14 in 1 : vector<4x256xf32>, vector<4x256xf32> -> vector<4x512xf32>
    %c0_18 = arith.constant 0 : index
    %c0_19 = arith.constant 0 : index
    %c0_20 = arith.constant 0 : index
    %16 = vector.load %arg4[%c0_18, %c0_19, %c0_20] : memref<9x8x512xf32, #tpu.memory_space<vmem>>, vector<1x8x512xf32>
    %17 = vector.shape_cast %16 : vector<1x8x512xf32> to vector<8x512xf32>
    %c17_i32 = arith.constant 17 : i32
    %18 = tpu.dynamic_rotate %15 by %c17_i32 dim 1 : vector<4x512xf32>, i32 -> vector<4x512xf32>
    %19 = vector.extract_strided_slice %17 {offsets = [0, 0], sizes = [4, 512], strides = [1, 1]} : vector<8x512xf32> to vector<4x512xf32>
    %20 = arith.mulf %18, %19 : vector<4x512xf32>
    %c0_21 = arith.constant 0 : index
    %c0_22 = arith.constant 0 : index
    %21 = vector.load %arg10[%c0_21, %c0_22] : memref<144x512xf32, #tpu.memory_space<vmem>>, vector<4x512xf32>
    tpu.vector_store %arg10[%c0_21, %c0_22], %20 {strides = array<i32>} : memref<144x512xf32, #tpu.memory_space<vmem>>, vector<4x512xf32>,
    %c17_i32_23 = arith.constant 17 : i32
    %22 = tpu.dynamic_rotate %10 by %c17_i32_23 dim 1 : vector<4x512xf32>, i32 -> vector<4x512xf32>
    %23 = vector.extract_strided_slice %17 {offsets = [0, 0], sizes = [4, 512], strides = [1, 1]} : vector<8x512xf32> to vector<4x512xf32>
    %24 = arith.mulf %22, %23 : vector<4x512xf32>
    %c8 = arith.constant 8 : index
    %c0_24 = arith.constant 0 : index
    %25 = vector.load %arg10[%c8, %c0_24] : memref<144x512xf32, #tpu.memory_space<vmem>>, vector<4x512xf32>
    tpu.vector_store %arg10[%c8, %c0_24], %24 {strides = array<i32>} : memref<144x512xf32, #tpu.memory_space<vmem>>, vector<4x512xf32>,
    %c1_25 = arith.constant 1 : index
    %c0_26 = arith.constant 0 : index
    %c0_27 = arith.constant 0 : index
    %26 = vector.load %arg4[%c1_25, %c0_26, %c0_27] : memref<9x8x512xf32, #tpu.memory_space<vmem>>, vector<1x8x512xf32>
    %27 = vector.shape_cast %26 : vector<1x8x512xf32> to vector<8x512xf32>
    %c16_i32 = arith.constant 16 : i32
    %28 = tpu.dynamic_rotate %15 by %c16_i32 dim 1 : vector<4x512xf32>, i32 -> vector<4x512xf32>
    %29 = vector.extract_strided_slice %27 {offsets = [0, 0], sizes = [4, 512], strides = [1, 1]} : vector<8x512xf32> to vector<4x512xf32>
    %30 = arith.mulf %28, %29 : vector<4x512xf32>
    %c16 = arith.constant 16 : index
    %c0_28 = arith.constant 0 : index
    %31 = vector.load %arg10[%c16, %c0_28] : memref<144x512xf32, #tpu.memory_space<vmem>>, vector<4x512xf32>
    tpu.vector_store %arg10[%c16, %c0_28], %30 {strides = array<i32>} : memref<144x512xf32, #tpu.memory_space<vmem>>, vector<4x512xf32>,
    %c16_i32_29 = arith.constant 16 : i32
    %32 = tpu.dynamic_rotate %10 by %c16_i32_29 dim 1 : vector<4x512xf32>, i32 -> vector<4x512xf32>
    %33 = vector.extract_strided_slice %27 {offsets = [0, 0], sizes = [4, 512], strides = [1, 1]} : vector<8x512xf32> to vector<4x512xf32>
    %34 = arith.mulf %32, %33 : vector<4x512xf32>
    %c24 = arith.constant 24 : index
    %c0_30 = arith.constant 0 : index
    %35 = vector.load %arg10[%c24, %c0_30] : memref<144x512xf32, #tpu.memory_space<vmem>>, vector<4x512xf32>
    tpu.vector_store %arg10[%c24, %c0_30], %34 {strides = array<i32>} : memref<144x512xf32, #tpu.memory_space<vmem>>, vector<4x512xf32>,
    %c2 = arith.constant 2 : index
    %c0_31 = arith.constant 0 : index
    %c0_32 = arith.constant 0 : index
    %36 = vector.load %arg4[%c2, %c0_31, %c0_32] : memref<9x8x512xf32, #tpu.memory_space<vmem>>, vector<1x8x512xf32>
    %37 = vector.shape_cast %36 : vector<1x8x512xf32> to vector<8x512xf32>
    %c15_i32 = arith.constant 15 : i32
    %38 = tpu.dynamic_rotate %15 by %c15_i32 dim 1 : vector<4x512xf32>, i32 -> vector<4x512xf32>
    %39 = vector.extract_strided_slice %37 {offsets = [0, 0], sizes = [4, 512], strides = [1, 1]} : vector<8x512xf32> to vector<4x512xf32>
    %40 = arith.mulf %38, %39 : vector<4x512xf32>
    %c32 = arith.constant 32 : index
    %c0_33 = arith.constant 0 : index
    %41 = vector.load %arg10[%c32, %c0_33] : memref<144x512xf32, #tpu.memory_space<vmem>>, vector<4x512xf32>
    tpu.vector_store %arg10[%c32, %c0_33], %40 {strides = array<i32>} : memref<144x512xf32, #tpu.memory_space<vmem>>, vector<4x512xf32>,
    %c15_i32_34 = arith.constant 15 : i32
    %42 = tpu.dynamic_rotate %10 by %c15_i32_34 dim 1 : vector<4x512xf32>, i32 -> vector<4x512xf32>
    %43 = vector.extract_strided_slice %37 {offsets = [0, 0], sizes = [4, 512], strides = [1, 1]} : vector<8x512xf32> to vector<4x512xf32>
    %44 = arith.mulf %42, %43 : vector<4x512xf32>
    %c40 = arith.constant 40 : index
    %c0_35 = arith.constant 0 : index
    %45 = vector.load %arg10[%c40, %c0_35] : memref<144x512xf32, #tpu.memory_space<vmem>>, vector<4x512xf32>
    tpu.vector_store %arg10[%c40, %c0_35], %44 {strides = array<i32>} : memref<144x512xf32, #tpu.memory_space<vmem>>, vector<4x512xf32>,
    %c3 = arith.constant 3 : index
    %c0_36 = arith.constant 0 : index
    %c0_37 = arith.constant 0 : index
    %46 = vector.load %arg4[%c3, %c0_36, %c0_37] : memref<9x8x512xf32, #tpu.memory_space<vmem>>, vector<1x8x512xf32>
    %47 = vector.shape_cast %46 : vector<1x8x512xf32> to vector<8x512xf32>
    %c1_i32 = arith.constant 1 : i32
    %48 = tpu.dynamic_rotate %15 by %c1_i32 dim 1 : vector<4x512xf32>, i32 -> vector<4x512xf32>
    %49 = vector.extract_strided_slice %47 {offsets = [0, 0], sizes = [4, 512], strides = [1, 1]} : vector<8x512xf32> to vector<4x512xf32>
    %50 = arith.mulf %48, %49 : vector<4x512xf32>
    %c48 = arith.constant 48 : index
    %c0_38 = arith.constant 0 : index
    %51 = vector.load %arg10[%c48, %c0_38] : memref<144x512xf32, #tpu.memory_space<vmem>>, vector<4x512xf32>
    tpu.vector_store %arg10[%c48, %c0_38], %50 {strides = array<i32>} : memref<144x512xf32, #tpu.memory_space<vmem>>, vector<4x512xf32>,
    %c1_i32_39 = arith.constant 1 : i32
    %52 = tpu.dynamic_rotate %10 by %c1_i32_39 dim 1 : vector<4x512xf32>, i32 -> vector<4x512xf32>
    %53 = vector.extract_strided_slice %47 {offsets = [0, 0], sizes = [4, 512], strides = [1, 1]} : vector<8x512xf32> to vector<4x512xf32>
    %54 = arith.mulf %52, %53 : vector<4x512xf32>
    %c56 = arith.constant 56 : index
    %c0_40 = arith.constant 0 : index
    %55 = vector.load %arg10[%c56, %c0_40] : memref<144x512xf32, #tpu.memory_space<vmem>>, vector<4x512xf32>
    tpu.vector_store %arg10[%c56, %c0_40], %54 {strides = array<i32>} : memref<144x512xf32, #tpu.memory_space<vmem>>, vector<4x512xf32>,
    %c64 = arith.constant 64 : index
    %c0_41 = arith.constant 0 : index
    %56 = vector.load %arg10[%c64, %c0_41] : memref<144x512xf32, #tpu.memory_space<vmem>>, vector<4x512xf32>
    tpu.vector_store %arg10[%c64, %c0_41], %15 {strides = array<i32>} : memref<144x512xf32, #tpu.memory_space<vmem>>, vector<4x512xf32>,
    %c72 = arith.constant 72 : index
    %c0_42 = arith.constant 0 : index
    %57 = vector.load %arg10[%c72, %c0_42] : memref<144x512xf32, #tpu.memory_space<vmem>>, vector<4x512xf32>
    tpu.vector_store %arg10[%c72, %c0_42], %10 {strides = array<i32>} : memref<144x512xf32, #tpu.memory_space<vmem>>, vector<4x512xf32>,
    %c5 = arith.constant 5 : index
    %c0_43 = arith.constant 0 : index
    %c0_44 = arith.constant 0 : index
    %58 = vector.load %arg4[%c5, %c0_43, %c0_44] : memref<9x8x512xf32, #tpu.memory_space<vmem>>, vector<1x8x512xf32>
    %59 = vector.shape_cast %58 : vector<1x8x512xf32> to vector<8x512xf32>
    %c511_i32 = arith.constant 511 : i32
    %60 = tpu.dynamic_rotate %15 by %c511_i32 dim 1 : vector<4x512xf32>, i32 -> vector<4x512xf32>
    %61 = vector.extract_strided_slice %59 {offsets = [0, 0], sizes = [4, 512], strides = [1, 1]} : vector<8x512xf32> to vector<4x512xf32>
    %62 = arith.mulf %60, %61 : vector<4x512xf32>
    %c80 = arith.constant 80 : index
    %c0_45 = arith.constant 0 : index
    %63 = vector.load %arg10[%c80, %c0_45] : memref<144x512xf32, #tpu.memory_space<vmem>>, vector<4x512xf32>
    tpu.vector_store %arg10[%c80, %c0_45], %62 {strides = array<i32>} : memref<144x512xf32, #tpu.memory_space<vmem>>, vector<4x512xf32>,
    %c511_i32_46 = arith.constant 511 : i32
    %64 = tpu.dynamic_rotate %10 by %c511_i32_46 dim 1 : vector<4x512xf32>, i32 -> vector<4x512xf32>
    %65 = vector.extract_strided_slice %59 {offsets = [0, 0], sizes = [4, 512], strides = [1, 1]} : vector<8x512xf32> to vector<4x512xf32>
    %66 = arith.mulf %64, %65 : vector<4x512xf32>
    %c88 = arith.constant 88 : index
    %c0_47 = arith.constant 0 : index
    %67 = vector.load %arg10[%c88, %c0_47] : memref<144x512xf32, #tpu.memory_space<vmem>>, vector<4x512xf32>
    tpu.vector_store %arg10[%c88, %c0_47], %66 {strides = array<i32>} : memref<144x512xf32, #tpu.memory_space<vmem>>, vector<4x512xf32>,
    %c6 = arith.constant 6 : index
    %c0_48 = arith.constant 0 : index
    %c0_49 = arith.constant 0 : index
    %68 = vector.load %arg4[%c6, %c0_48, %c0_49] : memref<9x8x512xf32, #tpu.memory_space<vmem>>, vector<1x8x512xf32>
    %69 = vector.shape_cast %68 : vector<1x8x512xf32> to vector<8x512xf32>
    %c497_i32 = arith.constant 497 : i32
    %70 = tpu.dynamic_rotate %15 by %c497_i32 dim 1 : vector<4x512xf32>, i32 -> vector<4x512xf32>
    %71 = vector.extract_strided_slice %69 {offsets = [0, 0], sizes = [4, 512], strides = [1, 1]} : vector<8x512xf32> to vector<4x512xf32>
    %72 = arith.mulf %70, %71 : vector<4x512xf32>
    %c96 = arith.constant 96 : index
    %c0_50 = arith.constant 0 : index
    %73 = vector.load %arg10[%c96, %c0_50] : memref<144x512xf32, #tpu.memory_space<vmem>>, vector<4x512xf32>
    tpu.vector_store %arg10[%c96, %c0_50], %72 {strides = array<i32>} : memref<144x512xf32, #tpu.memory_space<vmem>>, vector<4x512xf32>,
    %c497_i32_51 = arith.constant 497 : i32
    %74 = tpu.dynamic_rotate %10 by %c497_i32_51 dim 1 : vector<4x512xf32>, i32 -> vector<4x512xf32>
    %75 = vector.extract_strided_slice %69 {offsets = [0, 0], sizes = [4, 512], strides = [1, 1]} : vector<8x512xf32> to vector<4x512xf32>
    %76 = arith.mulf %74, %75 : vector<4x512xf32>
    %c104 = arith.constant 104 : index
    %c0_52 = arith.constant 0 : index
    %77 = vector.load %arg10[%c104, %c0_52] : memref<144x512xf32, #tpu.memory_space<vmem>>, vector<4x512xf32>
    tpu.vector_store %arg10[%c104, %c0_52], %76 {strides = array<i32>} : memref<144x512xf32, #tpu.memory_space<vmem>>, vector<4x512xf32>,
    %c7 = arith.constant 7 : index
    %c0_53 = arith.constant 0 : index
    %c0_54 = arith.constant 0 : index
    %78 = vector.load %arg4[%c7, %c0_53, %c0_54] : memref<9x8x512xf32, #tpu.memory_space<vmem>>, vector<1x8x512xf32>
    %79 = vector.shape_cast %78 : vector<1x8x512xf32> to vector<8x512xf32>
    %c496_i32 = arith.constant 496 : i32
    %80 = tpu.dynamic_rotate %15 by %c496_i32 dim 1 : vector<4x512xf32>, i32 -> vector<4x512xf32>
    %81 = vector.extract_strided_slice %79 {offsets = [0, 0], sizes = [4, 512], strides = [1, 1]} : vector<8x512xf32> to vector<4x512xf32>
    %82 = arith.mulf %80, %81 : vector<4x512xf32>
    %c112 = arith.constant 112 : index
    %c0_55 = arith.constant 0 : index
    %83 = vector.load %arg10[%c112, %c0_55] : memref<144x512xf32, #tpu.memory_space<vmem>>, vector<4x512xf32>
    tpu.vector_store %arg10[%c112, %c0_55], %82 {strides = array<i32>} : memref<144x512xf32, #tpu.memory_space<vmem>>, vector<4x512xf32>,
    %c496_i32_56 = arith.constant 496 : i32
    %84 = tpu.dynamic_rotate %10 by %c496_i32_56 dim 1 : vector<4x512xf32>, i32 -> vector<4x512xf32>
    %85 = vector.extract_strided_slice %79 {offsets = [0, 0], sizes = [4, 512], strides = [1, 1]} : vector<8x512xf32> to vector<4x512xf32>
    %86 = arith.mulf %84, %85 : vector<4x512xf32>
    %c120 = arith.constant 120 : index
    %c0_57 = arith.constant 0 : index
    %87 = vector.load %arg10[%c120, %c0_57] : memref<144x512xf32, #tpu.memory_space<vmem>>, vector<4x512xf32>
    tpu.vector_store %arg10[%c120, %c0_57], %86 {strides = array<i32>} : memref<144x512xf32, #tpu.memory_space<vmem>>, vector<4x512xf32>,
    %c8_58 = arith.constant 8 : index
    %c0_59 = arith.constant 0 : index
    %c0_60 = arith.constant 0 : index
    %88 = vector.load %arg4[%c8_58, %c0_59, %c0_60] : memref<9x8x512xf32, #tpu.memory_space<vmem>>, vector<1x8x512xf32>
    %89 = vector.shape_cast %88 : vector<1x8x512xf32> to vector<8x512xf32>
    %c495_i32 = arith.constant 495 : i32
    %90 = tpu.dynamic_rotate %15 by %c495_i32 dim 1 : vector<4x512xf32>, i32 -> vector<4x512xf32>
    %91 = vector.extract_strided_slice %89 {offsets = [0, 0], sizes = [4, 512], strides = [1, 1]} : vector<8x512xf32> to vector<4x512xf32>
    %92 = arith.mulf %90, %91 : vector<4x512xf32>
    %c128 = arith.constant 128 : index
    %c0_61 = arith.constant 0 : index
    %93 = vector.load %arg10[%c128, %c0_61] : memref<144x512xf32, #tpu.memory_space<vmem>>, vector<4x512xf32>
    tpu.vector_store %arg10[%c128, %c0_61], %92 {strides = array<i32>} : memref<144x512xf32, #tpu.memory_space<vmem>>, vector<4x512xf32>,
    %c495_i32_62 = arith.constant 495 : i32
    %94 = tpu.dynamic_rotate %10 by %c495_i32_62 dim 1 : vector<4x512xf32>, i32 -> vector<4x512xf32>
    %95 = vector.extract_strided_slice %89 {offsets = [0, 0], sizes = [4, 512], strides = [1, 1]} : vector<8x512xf32> to vector<4x512xf32>
    %96 = arith.mulf %94, %95 : vector<4x512xf32>
    %c136 = arith.constant 136 : index
    %c0_63 = arith.constant 0 : index
    %97 = vector.load %arg10[%c136, %c0_63] : memref<144x512xf32, #tpu.memory_space<vmem>>, vector<4x512xf32>
    tpu.vector_store %arg10[%c136, %c0_63], %96 {strides = array<i32>} : memref<144x512xf32, #tpu.memory_space<vmem>>, vector<4x512xf32>,
    %c0_64 = arith.constant 0 : index
    %c0_65 = arith.constant 0 : index
    %98 = vector.load %arg5[%c0_64, %c0_65] : memref<4x144xf32, #tpu.memory_space<vmem>>, vector<4x144xf32>
    %c0_66 = arith.constant 0 : index
    %c0_67 = arith.constant 0 : index
    %99 = vector.load %arg10[%c0_66, %c0_67] : memref<144x512xf32, #tpu.memory_space<vmem>>, vector<144x512xf32>
    %cst_68 = arith.constant dense<0.000000e+00> : vector<4x512xf32>
    %100 = tpu.matmul %98, %99, %cst_68 {dimension_numbers = #tpu.dot_dimension_numbers<[1], [0], [0], [1], [0, 0, 1, 1], [], []>} : vector<4x144xf32>, vector<144x512xf32>, vector<4x512xf32> -> vector<4x512xf32>
    %c0_69 = arith.constant 0 : index
    %c0_70 = arith.constant 0 : index
    %101 = vector.load %arg6[%c0_69, %c0_70] : memref<4x1xf32, #tpu.memory_space<vmem>>, vector<4x1xf32>
    %102 = vector.broadcast %101 : vector<4x1xf32> to vector<4x512xf32>
    %103 = arith.addf %100, %102 : vector<4x512xf32>
    %cst_71 = arith.constant 0.000000e+00 : f32
    %104 = vector.broadcast %cst_71 : f32 to vector<4x512xf32>
    %105 = arith.maximumf %103, %104 : vector<4x512xf32>
    %c0_72 = arith.constant 0 : index
    %c0_73 = arith.constant 0 : index
    %c0_74 = arith.constant 0 : index
    %106 = vector.load %arg4[%c0_72, %c0_73, %c0_74] : memref<9x8x512xf32, #tpu.memory_space<vmem>>, vector<1x8x512xf32>
    %107 = vector.shape_cast %106 : vector<1x8x512xf32> to vector<8x512xf32>
    %c17_i32_75 = arith.constant 17 : i32
    %108 = tpu.dynamic_rotate %105 by %c17_i32_75 dim 1 : vector<4x512xf32>, i32 -> vector<4x512xf32>
    %109 = vector.extract_strided_slice %107 {offsets = [0, 0], sizes = [4, 512], strides = [1, 1]} : vector<8x512xf32> to vector<4x512xf32>
    %110 = arith.mulf %108, %109 : vector<4x512xf32>
    %c0_76 = arith.constant 0 : index
    %c0_77 = arith.constant 0 : index
    %111 = vector.load %arg10[%c0_76, %c0_77] : memref<144x512xf32, #tpu.memory_space<vmem>>, vector<4x512xf32>
    tpu.vector_store %arg10[%c0_76, %c0_77], %110 {strides = array<i32>} : memref<144x512xf32, #tpu.memory_space<vmem>>, vector<4x512xf32>,
    %c1_78 = arith.constant 1 : index
    %c0_79 = arith.constant 0 : index
    %c0_80 = arith.constant 0 : index
    %112 = vector.load %arg4[%c1_78, %c0_79, %c0_80] : memref<9x8x512xf32, #tpu.memory_space<vmem>>, vector<1x8x512xf32>
    %113 = vector.shape_cast %112 : vector<1x8x512xf32> to vector<8x512xf32>
    %c16_i32_81 = arith.constant 16 : i32
    %114 = tpu.dynamic_rotate %105 by %c16_i32_81 dim 1 : vector<4x512xf32>, i32 -> vector<4x512xf32>
    %115 = vector.extract_strided_slice %113 {offsets = [0, 0], sizes = [4, 512], strides = [1, 1]} : vector<8x512xf32> to vector<4x512xf32>
    %116 = arith.mulf %114, %115 : vector<4x512xf32>
    %c8_82 = arith.constant 8 : index
    %c0_83 = arith.constant 0 : index
    %117 = vector.load %arg10[%c8_82, %c0_83] : memref<144x512xf32, #tpu.memory_space<vmem>>, vector<4x512xf32>
    tpu.vector_store %arg10[%c8_82, %c0_83], %116 {strides = array<i32>} : memref<144x512xf32, #tpu.memory_space<vmem>>, vector<4x512xf32>,
    %c2_84 = arith.constant 2 : index
    %c0_85 = arith.constant 0 : index
    %c0_86 = arith.constant 0 : index
    %118 = vector.load %arg4[%c2_84, %c0_85, %c0_86] : memref<9x8x512xf32, #tpu.memory_space<vmem>>, vector<1x8x512xf32>
    %119 = vector.shape_cast %118 : vector<1x8x512xf32> to vector<8x512xf32>
    %c15_i32_87 = arith.constant 15 : i32
    %120 = tpu.dynamic_rotate %105 by %c15_i32_87 dim 1 : vector<4x512xf32>, i32 -> vector<4x512xf32>
    %121 = vector.extract_strided_slice %119 {offsets = [0, 0], sizes = [4, 512], strides = [1, 1]} : vector<8x512xf32> to vector<4x512xf32>
    %122 = arith.mulf %120, %121 : vector<4x512xf32>
    %c16_88 = arith.constant 16 : index
    %c0_89 = arith.constant 0 : index
    %123 = vector.load %arg10[%c16_88, %c0_89] : memref<144x512xf32, #tpu.memory_space<vmem>>, vector<4x512xf32>
    tpu.vector_store %arg10[%c16_88, %c0_89], %122 {strides = array<i32>} : memref<144x512xf32, #tpu.memory_space<vmem>>, vector<4x512xf32>,
    %c3_90 = arith.constant 3 : index
    %c0_91 = arith.constant 0 : index
    %c0_92 = arith.constant 0 : index
    %124 = vector.load %arg4[%c3_90, %c0_91, %c0_92] : memref<9x8x512xf32, #tpu.memory_space<vmem>>, vector<1x8x512xf32>
    %125 = vector.shape_cast %124 : vector<1x8x512xf32> to vector<8x512xf32>
    %c1_i32_93 = arith.constant 1 : i32
    %126 = tpu.dynamic_rotate %105 by %c1_i32_93 dim 1 : vector<4x512xf32>, i32 -> vector<4x512xf32>
    %127 = vector.extract_strided_slice %125 {offsets = [0, 0], sizes = [4, 512], strides = [1, 1]} : vector<8x512xf32> to vector<4x512xf32>
    %128 = arith.mulf %126, %127 : vector<4x512xf32>
    %c24_94 = arith.constant 24 : index
    %c0_95 = arith.constant 0 : index
    %129 = vector.load %arg10[%c24_94, %c0_95] : memref<144x512xf32, #tpu.memory_space<vmem>>, vector<4x512xf32>
    tpu.vector_store %arg10[%c24_94, %c0_95], %128 {strides = array<i32>} : memref<144x512xf32, #tpu.memory_space<vmem>>, vector<4x512xf32>,
    %c32_96 = arith.constant 32 : index
    %c0_97 = arith.constant 0 : index
    %130 = vector.load %arg10[%c32_96, %c0_97] : memref<144x512xf32, #tpu.memory_space<vmem>>, vector<4x512xf32>
    tpu.vector_store %arg10[%c32_96, %c0_97], %105 {strides = array<i32>} : memref<144x512xf32, #tpu.memory_space<vmem>>, vector<4x512xf32>,
    %c5_98 = arith.constant 5 : index
    %c0_99 = arith.constant 0 : index
    %c0_100 = arith.constant 0 : index
    %131 = vector.load %arg4[%c5_98, %c0_99, %c0_100] : memref<9x8x512xf32, #tpu.memory_space<vmem>>, vector<1x8x512xf32>
    %132 = vector.shape_cast %131 : vector<1x8x512xf32> to vector<8x512xf32>
    %c511_i32_101 = arith.constant 511 : i32
    %133 = tpu.dynamic_rotate %105 by %c511_i32_101 dim 1 : vector<4x512xf32>, i32 -> vector<4x512xf32>
    %134 = vector.extract_strided_slice %132 {offsets = [0, 0], sizes = [4, 512], strides = [1, 1]} : vector<8x512xf32> to vector<4x512xf32>
    %135 = arith.mulf %133, %134 : vector<4x512xf32>
    %c40_102 = arith.constant 40 : index
    %c0_103 = arith.constant 0 : index
    %136 = vector.load %arg10[%c40_102, %c0_103] : memref<144x512xf32, #tpu.memory_space<vmem>>, vector<4x512xf32>
    tpu.vector_store %arg10[%c40_102, %c0_103], %135 {strides = array<i32>} : memref<144x512xf32, #tpu.memory_space<vmem>>, vector<4x512xf32>,
    %c6_104 = arith.constant 6 : index
    %c0_105 = arith.constant 0 : index
    %c0_106 = arith.constant 0 : index
    %137 = vector.load %arg4[%c6_104, %c0_105, %c0_106] : memref<9x8x512xf32, #tpu.memory_space<vmem>>, vector<1x8x512xf32>
    %138 = vector.shape_cast %137 : vector<1x8x512xf32> to vector<8x512xf32>
    %c497_i32_107 = arith.constant 497 : i32
    %139 = tpu.dynamic_rotate %105 by %c497_i32_107 dim 1 : vector<4x512xf32>, i32 -> vector<4x512xf32>
    %140 = vector.extract_strided_slice %138 {offsets = [0, 0], sizes = [4, 512], strides = [1, 1]} : vector<8x512xf32> to vector<4x512xf32>
    %141 = arith.mulf %139, %140 : vector<4x512xf32>
    %c48_108 = arith.constant 48 : index
    %c0_109 = arith.constant 0 : index
    %142 = vector.load %arg10[%c48_108, %c0_109] : memref<144x512xf32, #tpu.memory_space<vmem>>, vector<4x512xf32>
    tpu.vector_store %arg10[%c48_108, %c0_109], %141 {strides = array<i32>} : memref<144x512xf32, #tpu.memory_space<vmem>>, vector<4x512xf32>,
    %c7_110 = arith.constant 7 : index
    %c0_111 = arith.constant 0 : index
    %c0_112 = arith.constant 0 : index
    %143 = vector.load %arg4[%c7_110, %c0_111, %c0_112] : memref<9x8x512xf32, #tpu.memory_space<vmem>>, vector<1x8x512xf32>
    %144 = vector.shape_cast %143 : vector<1x8x512xf32> to vector<8x512xf32>
    %c496_i32_113 = arith.constant 496 : i32
    %145 = tpu.dynamic_rotate %105 by %c496_i32_113 dim 1 : vector<4x512xf32>, i32 -> vector<4x512xf32>
    %146 = vector.extract_strided_slice %144 {offsets = [0, 0], sizes = [4, 512], strides = [1, 1]} : vector<8x512xf32> to vector<4x512xf32>
    %147 = arith.mulf %145, %146 : vector<4x512xf32>
    %c56_114 = arith.constant 56 : index
    %c0_115 = arith.constant 0 : index
    %148 = vector.load %arg10[%c56_114, %c0_115] : memref<144x512xf32, #tpu.memory_space<vmem>>, vector<4x512xf32>
    tpu.vector_store %arg10[%c56_114, %c0_115], %147 {strides = array<i32>} : memref<144x512xf32, #tpu.memory_space<vmem>>, vector<4x512xf32>,
    %c8_116 = arith.constant 8 : index
    %c0_117 = arith.constant 0 : index
    %c0_118 = arith.constant 0 : index
    %149 = vector.load %arg4[%c8_116, %c0_117, %c0_118] : memref<9x8x512xf32, #tpu.memory_space<vmem>>, vector<1x8x512xf32>
    %150 = vector.shape_cast %149 : vector<1x8x512xf32> to vector<8x512xf32>
    %c495_i32_119 = arith.constant 495 : i32
    %151 = tpu.dynamic_rotate %105 by %c495_i32_119 dim 1 : vector<4x512xf32>, i32 -> vector<4x512xf32>
    %152 = vector.extract_strided_slice %150 {offsets = [0, 0], sizes = [4, 512], strides = [1, 1]} : vector<8x512xf32> to vector<4x512xf32>
    %153 = arith.mulf %151, %152 : vector<4x512xf32>
    %c64_120 = arith.constant 64 : index
    %c0_121 = arith.constant 0 : index
    %154 = vector.load %arg10[%c64_120, %c0_121] : memref<144x512xf32, #tpu.memory_space<vmem>>, vector<4x512xf32>
    tpu.vector_store %arg10[%c64_120, %c0_121], %153 {strides = array<i32>} : memref<144x512xf32, #tpu.memory_space<vmem>>, vector<4x512xf32>,
    %c0_122 = arith.constant 0 : index
    %c0_123 = arith.constant 0 : index
    %155 = vector.load %arg7[%c0_122, %c0_123] : memref<4x72xf32, #tpu.memory_space<vmem>>, vector<4x72xf32>
    %c0_124 = arith.constant 0 : index
    %c0_125 = arith.constant 0 : index
    %156 = vector.load %arg10[%c0_124, %c0_125] : memref<144x512xf32, #tpu.memory_space<vmem>>, vector<72x512xf32>
    %cst_126 = arith.constant dense<0.000000e+00> : vector<4x512xf32>
    %157 = tpu.matmul %155, %156, %cst_126 {dimension_numbers = #tpu.dot_dimension_numbers<[1], [0], [0], [1], [0, 0, 1, 1], [], []>} : vector<4x72xf32>, vector<72x512xf32>, vector<4x512xf32> -> vector<4x512xf32>
    %c0_127 = arith.constant 0 : index
    %c0_128 = arith.constant 0 : index
    %158 = vector.load %arg8[%c0_127, %c0_128] : memref<4x1xf32, #tpu.memory_space<vmem>>, vector<4x1xf32>
    %159 = vector.broadcast %158 : vector<4x1xf32> to vector<4x512xf32>
    %160 = arith.addf %157, %159 : vector<4x512xf32>
    %cst_129 = arith.constant 0.000000e+00 : f32
    %161 = vector.broadcast %cst_129 : f32 to vector<4x512xf32>
    %162 = arith.maximumf %160, %161 : vector<4x512xf32>
    %163 = vector.extract_strided_slice %162 {offsets = [0, 0], sizes = [4, 256], strides = [1, 1]} : vector<4x512xf32> to vector<4x256xf32>
    %c0_130 = arith.constant 0 : index
    %c0_131 = arith.constant 0 : index
    %c0_132 = arith.constant 0 : index
    %164 = vector.load %arg9[%c0_130, %c0_131, %c0_132] : memref<2x4x256xf32, #tpu.memory_space<vmem>>, vector<1x4x256xf32>
    %165 = vector.shape_cast %164 : vector<1x4x256xf32> to vector<4x256xf32>
    %166 = vector.shape_cast %163 : vector<4x256xf32> to vector<1x4x256xf32>
    tpu.vector_store %arg9[%c0_130, %c0_131, %c0_132], %166 {strides = array<i32>} : memref<2x4x256xf32, #tpu.memory_space<vmem>>, vector<1x4x256xf32>,
    %167 = vector.extract_strided_slice %162 {offsets = [0, 256], sizes = [4, 256], strides = [1, 1]} : vector<4x512xf32> to vector<4x256xf32>
    %c1_133 = arith.constant 1 : index
    %c0_134 = arith.constant 0 : index
    %c0_135 = arith.constant 0 : index
    %168 = vector.load %arg9[%c1_133, %c0_134, %c0_135] : memref<2x4x256xf32, #tpu.memory_space<vmem>>, vector<1x4x256xf32>
    %169 = vector.shape_cast %168 : vector<1x4x256xf32> to vector<4x256xf32>
    %170 = vector.shape_cast %167 : vector<4x256xf32> to vector<1x4x256xf32>
    tpu.vector_store %arg9[%c1_133, %c0_134, %c0_135], %170 {strides = array<i32>} : memref<2x4x256xf32, #tpu.memory_space<vmem>>, vector<1x4x256xf32>,
    return
  }
  func.func @transform_0(%arg0: i32) -> (i32, i32, i32) {
    %c0_i32 = arith.constant 0 : i32
    %c0_i32_0 = arith.constant 0 : i32
    %c0_i32_1 = arith.constant 0 : i32
    return %arg0, %c0_i32, %c0_i32_0 : i32, i32, i32
  }
  func.func @transform_1(%arg0: i32) -> (i32, i32, i32) {
    %c0_i32 = arith.constant 0 : i32
    %c0_i32_0 = arith.constant 0 : i32
    %c0_i32_1 = arith.constant 0 : i32
    return %arg0, %c0_i32, %c0_i32_0 : i32, i32, i32
  }
  func.func @transform_2(%arg0: i32) -> (i32, i32) {
    %c0_i32 = arith.constant 0 : i32
    %c0_i32_0 = arith.constant 0 : i32
    %c0_i32_1 = arith.constant 0 : i32
    return %c0_i32, %c0_i32_0 : i32, i32
  }
  func.func @transform_3(%arg0: i32) -> (i32, i32, i32) {
    %c0_i32 = arith.constant 0 : i32
    %c0_i32_0 = arith.constant 0 : i32
    %c0_i32_1 = arith.constant 0 : i32
    %c0_i32_2 = arith.constant 0 : i32
    return %c0_i32, %c0_i32_0, %c0_i32_1 : i32, i32, i32
  }
  func.func @transform_4(%arg0: i32) -> (i32, i32) {
    %c0_i32 = arith.constant 0 : i32
    %c0_i32_0 = arith.constant 0 : i32
    %c0_i32_1 = arith.constant 0 : i32
    return %c0_i32, %c0_i32_0 : i32, i32
  }
  func.func @transform_5(%arg0: i32) -> (i32, i32) {
    %c0_i32 = arith.constant 0 : i32
    %c0_i32_0 = arith.constant 0 : i32
    %c0_i32_1 = arith.constant 0 : i32
    return %c0_i32, %c0_i32_0 : i32, i32
  }
  func.func @transform_6(%arg0: i32) -> (i32, i32) {
    %c0_i32 = arith.constant 0 : i32
    %c0_i32_0 = arith.constant 0 : i32
    %c0_i32_1 = arith.constant 0 : i32
    return %c0_i32, %c0_i32_0 : i32, i32
  }
  func.func @transform_7(%arg0: i32) -> (i32, i32) {
    %c0_i32 = arith.constant 0 : i32
    %c0_i32_0 = arith.constant 0 : i32
    %c0_i32_1 = arith.constant 0 : i32
    return %c0_i32, %c0_i32_0 : i32, i32
  }
  func.func @transform_8(%arg0: i32) -> (i32, i32, i32) {
    %c0_i32 = arith.constant 0 : i32
    %c0_i32_0 = arith.constant 0 : i32
    %c0_i32_1 = arith.constant 0 : i32
    return %arg0, %c0_i32, %c0_i32_0 : i32, i32, i32
  }
}

</mosaic_0001>

<bundles_post_ra>
// kernel: tpu_custom_call.1
= control target key start
LH: loop header
LB: loop body
LE: loop exit
PB: predicated region body
PF: predicated region fallthrough
CT: control target
= control target key end

     0   :  { %13 = vsyncpa [#allocation4], 0  ;;  %s2277_s0 = inlined_call_operand.vmem [shape: f32[2,4,64], index: 0, kind: input, shape index: {}]   ;;  %s2278_s1 = inlined_call_operand.hbm [shape: f32[2,4,256], index: 1, kind: input, shape index: {}]   ;;  %s2279_s2 = inlined_call_operand.hbm [shape: f32[64,256], index: 2, kind: input, shape index: {}]   ;;  %s2280_s3 = inlined_call_operand.hbm [shape: f32[9,8,512], index: 3, kind: input, shape index: {}]   ;;  %s2281_s4 = inlined_call_operand.vmem [shape: f32[4,144], index: 4, kind: input, shape index: {}]   ;;  %s2282_s5 = inlined_call_operand.vmem [shape: f32[4,1], index: 5, kind: input, shape index: {}]   ;;  %s2283_s6 = inlined_call_operand.vmem [shape: f32[4,72], index: 6, kind: input, shape index: {}]   ;;  %s2284_s7 = inlined_call_operand.vmem [shape: f32[4,1], index: 7, kind: input, shape index: {}]   ;;  %s2285_s8 = inlined_call_operand.hbm [shape: f32[2,4,256], index: 8, kind: output, shape index: {}]  }
   0x1   :  { %14 = vsyncpa [#allocation7], 0 }
   0x2   :  { %15 = vsyncpa [#allocation5], 0  ;;  %s1619_s27 = smov [#allocation6]   ;;  %s1525_s9 = scalar_lea.hbm %s2279_s2, 2048 }
   0x3   :  { %s35_s28 = sshll.u32 %s1619_s27, 4  ;;  %p1526_p0 = scmp.ne.s32.totalorder %s2279_s2, %s1525_s9  ;;  %s36_s28 = int_to_ptr.vmem [resolvable:$true] %s35_s28 }
   0x4   :  { %p1529_p1 = scmp.lt.u32.totalorder %s1525_s9, %s2279_s2 }
   0x6   :  { %p1531_p2 = pnand %p1529_p1, %p1526_p0 }
   0x8   :  { %1534 = shalt.err (!%p1531_p2)
}
   0x9   :  { %s1535_s14 = scalar_lea.vmem %s36_s28, 2048  ;;  %p1540_p4 = scmp.lt.s32.totalorder %s36_s28, %s36_s28 }
   0xa   :  { %p1536_p3 = scmp.ne.s32.totalorder %s36_s28, %s1535_s14  ;;  %p1541_p5 = scmp.lt.s32.totalorder %s1535_s14, %s1535_s14 }
   0xc   :  { %p1542_p6 = por %p1541_p5, %p1540_p4 }
   0xe   :  { %p1543_p7 = pnand %p1542_p6, %p1536_p3 }
  0x10   :  { %1546 = shalt.err (!%p1543_p7)
}
  0x11   :  { %s1620_s15 = smov 256   ;;  %s1621_s16 = smov 16  }
  0x12   :  { %41 = dma.hbm_to_vmem [thread:$0]  %s2279_s2, 2048, %s36_s28, [#allocation7], %s1620_s15, %s1620_s15, %s1621_s16  }
  0x13   :  { %s1622_s19 = smov [#allocation3]   ;;  %s1547_s23 = scalar_lea.hbm %s2278_s1, 256 }
  0x14   :  { %s23_s20 = sshll.u32 %s1622_s19, 4  ;;  %p1548_p8 = scmp.ne.s32.totalorder %s2278_s1, %s1547_s23  ;;  %s24_s20 = int_to_ptr.vmem [resolvable:$true] %s23_s20 }
  0x15   :  { %p1551_p9 = scmp.lt.u32.totalorder %s1547_s23, %s2278_s1 }
  0x17   :  { %p1553_p10 = pnand %p1551_p9, %p1548_p8 }
  0x19   :  { %1556 = shalt.err (!%p1553_p10)
}
  0x1a   :  { %s1557_s29 = scalar_lea.vmem %s24_s20, 256  ;;  %p1562_p12 = scmp.lt.s32.totalorder %s24_s20, %s24_s20 }
  0x1b   :  { %p1558_p11 = scmp.ne.s32.totalorder %s24_s20, %s1557_s29  ;;  %p1563_p13 = scmp.lt.s32.totalorder %s1557_s29, %s1557_s29 }
  0x1d   :  { %p1564_p0 = por %p1563_p13, %p1562_p12 }
  0x1f   :  { %p1565_p1 = pnand %p1564_p0, %p1558_p11 }
  0x21   :  { %1568 = shalt.err (!%p1565_p1)
}
  0x22   :  { %s1623_s2 = smov 128   ;;  %s1624_s28 = smov 8  }
  0x23   :  { %29 = dma.hbm_to_vmem [thread:$0]  %s2278_s1, 256, %s24_s20, [#allocation4], %s1623_s2, %s1623_s2, %s1624_s28  }
  0x24   :  { %s1625_s10 = smov [#allocation8]   ;;  %s1569_s14 = scalar_lea.hbm %s2280_s3, 4608 }
  0x25   :  { %s47_s11 = sshll.u32 %s1625_s10, 4  ;;  %p1570_p2 = scmp.ne.s32.totalorder %s2280_s3, %s1569_s14  ;;  %s48_s11 = int_to_ptr.vmem [resolvable:$true] %s47_s11 }
  0x26   :  { %p1573_p3 = scmp.lt.u32.totalorder %s1569_s14, %s2280_s3 }
  0x28   :  { %p1575_p4 = pnand %p1573_p3, %p1570_p2 }
  0x2a   :  { %1578 = shalt.err (!%p1575_p4)
}
  0x2b   :  { %s1579_s21 = scalar_lea.vmem %s48_s11, 4608  ;;  %p1584_p6 = scmp.lt.s32.totalorder %s48_s11, %s48_s11 }
  0x2c   :  { %p1580_p5 = scmp.ne.s32.totalorder %s48_s11, %s1579_s21  ;;  %p1585_p7 = scmp.lt.s32.totalorder %s1579_s21, %s1579_s21 }
  0x2e   :  { %p1586_p8 = por %p1585_p7, %p1584_p6 }
  0x30   :  { %p1587_p9 = pnand %p1586_p8, %p1580_p5 }
  0x32   :  { %1590 = shalt.err (!%p1587_p9)
}
  0x33   :  { %s1626_s1 = smov 512   ;;  %s1627_s20 = smov 32  }
  0x34   :  { %53 = dma.hbm_to_vmem [thread:$0]  %s2280_s3, 4608, %s48_s11, [#allocation7], %s1626_s1, %s1626_s1, %s1627_s20  }
  0x35   :  { %1613 = dma.done.wait [#allocation4], 256  }
  0x36   :  { %1614 = vsyncadd [#allocation4], 4294967040 }
  0x37   :  { %1615 = dma.done.wait [#allocation7], 6656  }
  0x38   :  { %1616 = vsyncadd [#allocation7], 4294960640  ;;  %v1628_v0 = vmov 0.0   ;;  %v145_v1 = vld [vmem:[#allocation6 + $0x8] sm:$0xff]  ;;  %v147_v2 = vld [vmem:[#allocation6 + $0x18] sm:$0xff]  ;;  %s1629_s3 = smov 17   ;;  %v332_v33 = vlaneseq }
  0x39   :  { %228 = vmatprep.mubr.f32.mxu0 %v1628_v0  ;;  %71 = vst [vmem:[#allocation2] sm:$0xff] %v1628_v0  ;;  %72 = vst [vmem:[#allocation2 + $0x8] sm:$0xff] %v1628_v0  ;;  %304 = vmatprep.mubr.f32.mxu1 %v1628_v0  ;;  %v144_v3 = vld [vmem:[#allocation6] sm:$0xff]  ;;  %v1352_v4 = vpack.c.bf16 %v147_v2, %v145_v1  ;;  %v146_v5 = vld [vmem:[#allocation6 + $0x10] sm:$0xff]  ;;  %vm160_vm0 = vcmask 523264   ;;  %s1630_s29 = smov 15  }
  0x3a   :  { %73 = vst [vmem:[#allocation2 + $0x10] sm:$0xff] %v1628_v0  ;;  %74 = vst [vmem:[#allocation2 + $0x18] sm:$0xff] %v1628_v0  ;;  %v149_v6 = vld [vmem:[#allocation6 + $0x28] sm:$0xff]  ;;  %v151_v7 = vld [vmem:[#allocation6 + $0x38] sm:$0xff]  ;;  %v1354_v8 = vpack.c.bf16 %v146_v5, %v144_v3  ;;  %s1631_s30 = smov 1   ;;  %s1633_s9 = smov 113  }
  0x3b   :  { %75 = vst [vmem:[#allocation2 + $0x20] sm:$0xff] %v1628_v0  ;;  %76 = vst [vmem:[#allocation2 + $0x28] sm:$0xff] %v1628_v0  ;;  %v1356_v9 = vpack.c.bf16 %v151_v7, %v149_v6  ;;  %v148_v10 = vld [vmem:[#allocation6 + $0x20] sm:$0xff]  ;;  %v150_v11 = vld [vmem:[#allocation6 + $0x30] sm:$0xff]  ;;  %1353 = vmatprep.subr.bf16.mxu0 %v1352_v4  ;;  %1369 = vmatprep.subr.bf16.mxu1 %v1352_v4  ;;  %s1634_s10 = smov 112   ;;  %s1635_s11 = smov 111  }
  0x3c   :  { %77 = vst [vmem:[#allocation2 + $0x30] sm:$0xff] %v1628_v0  ;;  %78 = vst [vmem:[#allocation2 + $0x38] sm:$0xff] %v1628_v0  ;;  %v153_v12 = vld [vmem:[#allocation6 + $0x48] sm:$0xff]  ;;  %v155_v13 = vld [vmem:[#allocation6 + $0x58] sm:$0xff]  ;;  %1355 = vmatpush1.bf16.msra.mxu0 %v1354_v8  ;;  %1371 = vmatpush1.bf16.msra.mxu1 %v1354_v8  ;;  %v1358_v14 = vpack.c.bf16 %v150_v11, %v148_v10  ;;  %v1848_v36 = vand.u32 127, %v332_v33  ;;  %vm778_vm9 = vcmask 130048  }
  0x3d   :  { %79 = vst [vmem:[#allocation2 + $0x40] sm:$0xff] %v1628_v0  ;;  %80 = vst [vmem:[#allocation2 + $0x48] sm:$0xff] %v1628_v0  ;;  %1357 = vmatprep.subr.bf16.mxu0 %v1356_v9  ;;  %1373 = vmatprep.subr.bf16.mxu1 %v1356_v9  ;;  %v1360_v15 = vpack.c.bf16 %v155_v13, %v153_v12  ;;  %v152_v16 = vld [vmem:[#allocation6 + $0x40] sm:$0xff]  ;;  %v154_v17 = vld [vmem:[#allocation6 + $0x50] sm:$0xff]  ;;  %vm1166_vm10 = vcmask 588800  }
  0x3e   :  { %81 = vst [vmem:[#allocation2 + $0x50] sm:$0xff] %v1628_v0  ;;  %82 = vst [vmem:[#allocation2 + $0x58] sm:$0xff] %v1628_v0  ;;  %v157_v18 = vld [vmem:[#allocation6 + $0x68] sm:$0xff]  ;;  %v159_v19 = vld [vmem:[#allocation6 + $0x78] sm:$0xff]  ;;  %v1362_v24 = vpack.c.bf16 %v154_v17, %v152_v16  ;;  %vm334_vm1 = vcmp.lt.s32.totalorder %v1848_v36, 17  ;;  %vm380_vm2 = vcmp.lt.s32.totalorder %v1848_v36, 16 }
  0x3f   :  { %83 = vst [vmem:[#allocation2 + $0x60] sm:$0xff] %v1628_v0  ;;  %84 = vst [vmem:[#allocation2 + $0x68] sm:$0xff] %v1628_v0  ;;  %v1797_v20 = vld [vmem:[#allocation3 + $0x8] sm:$0xff]  ;;  %v311_v21 = vld [vmem:[#allocation3] sm:$0xff]  ;;  %v1364_v25 = vpack.c.bf16 %v159_v19, %v157_v18  ;;  %vm426_vm3 = vcmp.lt.s32.totalorder %v1848_v36, 15  ;;  %vm472_vm4 = vcmp.lt.s32.totalorder %v1848_v36, 1 }
  0x40   :  { %85 = vst [vmem:[#allocation2 + $0x70] sm:$0xff] %v1628_v0  ;;  %86 = vst [vmem:[#allocation2 + $0x78] sm:$0xff] %v1628_v0  ;;  %328 = vrot.lane.b32.xlu1 %v1797_v20, %s1629_s3  ;;  %324 = vrot.lane.b32.xlu0 %v311_v21, %s1629_s3  ;;  %v318_v22 = vcombine.high %v1797_v20, %v1797_v20  ;;  %v315_v23 = vcombine.high %v311_v21, %v311_v21  ;;  %v156_v26 = vld [vmem:[#allocation6 + $0x60] sm:$0xff]  ;;  %v158_v27 = vld [vmem:[#allocation6 + $0x70] sm:$0xff]  ;;  %vm526_vm5 = vcmp.lt.s32.totalorder %v1848_v36, 127 }
  0x41   :  { %87 = vst [vmem:[#allocation2 + $0x80] sm:$0xff] %v1628_v0  ;;  %88 = vst [vmem:[#allocation2 + $0x88] sm:$0xff] %v1628_v0  ;;  %1359 = vmatpush1.bf16.msra.mxu0 %v1358_v14  ;;  %1375 = vmatpush1.bf16.msra.mxu1 %v1358_v14  ;;  %v1366_v28 = vpack.c.bf16 %v158_v27, %v156_v26  ;;  %v143_v29 = vld [vmem:[%s2277_s0] sm:$0xf]  ;;  %v1346_v30 = vld [vmem:[%s2277_s0 + $0x4] sm:$0xf] }
  0x42   :  { %89 = vst [vmem:[#allocation2 + $0x90] sm:$0xff] %v1628_v0  ;;  %90 = vst [vmem:[#allocation2 + $0x98] sm:$0xff] %v1628_v0  ;;  %1361 = vmatprep.subr.bf16.mxu0 %v1360_v15  ;;  %1377 = vmatprep.subr.bf16.mxu1 %v1360_v15  ;;  %s1632_s0 = smov 127   ;;  %v1850_v37 = vld [vmem:[#allocation8] sm:$0xff]  ;;  %v1852_v38 = vld [vmem:[#allocation8 + $0x18] sm:$0xff]  ;;  %vm572_vm6 = vcmp.lt.s32.totalorder %v1848_v36, 113 }
  0x43   :  { %91 = vst [vmem:[#allocation2 + $0xa0] sm:$0xff] %v1628_v0  ;;  %92 = vst [vmem:[#allocation2 + $0xa8] sm:$0xff] %v1628_v0  ;;  %v1855_v39 = vld [vmem:[#allocation8 + $0x28] sm:$0xff]  ;;  %v1860_v42 = vld [vmem:[#allocation8 + $0x10] sm:$0xff]  ;;  %vm618_vm7 = vcmp.lt.s32.totalorder %v1848_v36, 112  ;;  %vm664_vm8 = vcmp.lt.s32.totalorder %v1848_v36, 111 }
  0x44   :  { %93 = vst [vmem:[#allocation2 + $0xb0] sm:$0xff] %v1628_v0  ;;  %94 = vst [vmem:[#allocation2 + $0xb8] sm:$0xff] %v1628_v0  ;;  %330 = vrot.lane.b32.xlu1 %v318_v22, %s1629_s3  ;;  %372 = vrot.lane.b32.xlu0 %v311_v21, %s1621_s16  ;;  %v1858_v41 = vld [vmem:[#allocation8 + $0x8] sm:$0xff]  ;;  %v1877_v54 = vld [vmem:[#allocation8 + $0x20] sm:$0xff] }
  0x45   :  { %95 = vst [vmem:[#allocation2 + $0xc0] sm:$0xff] %v1628_v0  ;;  %96 = vst [vmem:[#allocation2 + $0xc8] sm:$0xff] %v1628_v0  ;;  %1363 = vmatpush1.bf16.msra.mxu0 %v1362_v24  ;;  %1379 = vmatpush1.bf16.msra.mxu1 %v1362_v24  ;;  %v1882_v59 = vld [vmem:[#allocation8 + $0x30] sm:$0xff]  ;;  %v1884_v60 = vld [vmem:[#allocation8 + $0x38] sm:$0xff] }
  0x46   :  { %97 = vst [vmem:[#allocation2 + $0xd0] sm:$0xff] %v1628_v0  ;;  %98 = vst [vmem:[#allocation2 + $0xd8] sm:$0xff] %v1628_v0  ;;  %1365 = vmatprep.subr.bf16.mxu0 %v1364_v25  ;;  %1381 = vmatprep.subr.bf16.mxu1 %v1364_v25  ;;  %v1893_v3 = vld [vmem:[#allocation8 + $0x40] sm:$0xff]  ;;  %v1895_v4 = vld [vmem:[#allocation8 + $0x48] sm:$0xff] }
  0x47   :  { %99 = vst [vmem:[#allocation2 + $0xe0] sm:$0xff] %v1628_v0  ;;  %100 = vst [vmem:[#allocation2 + $0xe8] sm:$0xff] %v1628_v0  ;;  %v1903_v11 = vld [vmem:[#allocation8 + $0x50] sm:$0xff]  ;;  %v1905_v12 = vld [vmem:[#allocation8 + $0x58] sm:$0xff] }
  0x48   :  { %101 = vst [vmem:[#allocation2 + $0xf0] sm:$0xff] %v1628_v0  ;;  %102 = vst [vmem:[#allocation2 + $0xf8] sm:$0xff] %v1628_v0  ;;  %374 = vrot.lane.b32.xlu1 %v315_v23, %s1621_s16  ;;  %326 = vrot.lane.b32.xlu0 %v315_v23, %s1629_s3  ;;  %v1914_v19 = vld [vmem:[#allocation8 + $0x60] sm:$0xff]  ;;  %v1924_v27 = vld [vmem:[#allocation8 + $0x70] sm:$0xff] }
  0x49   :  { %103 = vst [vmem:[#allocation2 + $0x100] sm:$0xff] %v1628_v0  ;;  %104 = vst [vmem:[#allocation2 + $0x108] sm:$0xff] %v1628_v0  ;;  %1367 = vmatpush1.bf16.msra.mxu0 %v1366_v28  ;;  %1383 = vmatpush1.bf16.msra.mxu1 %v1366_v28  ;;  %v1926_v28 = vld [vmem:[#allocation8 + $0x78] sm:$0xff]  ;;  %v1123_v36 = vld [vmem:[%s2283_s6] sm:$0xf]  ;;  %s1637_s6 = smov [#allocation9]  }
  0x4a   :  { %105 = vst [vmem:[#allocation2 + $0x110] sm:$0xff] %v1628_v0  ;;  %106 = vst [vmem:[#allocation2 + $0x118] sm:$0xff] %v1628_v0  ;;  %s1332_s17 = sshll.u32 %s1637_s6, 4  ;;  %s1333_s17 = int_to_ptr.vmem [resolvable:$true] %s1332_s17 }
  0x4b   :  { %107 = vst [vmem:[#allocation2 + $0x120] sm:$0xff] %v1628_v0  ;;  %108 = vst [vmem:[#allocation2 + $0x128] sm:$0xff] %v1628_v0  ;;  %s1591_s18 = scalar_lea.vmem %s1333_s17, 256  ;;  %p1596_p11 = scmp.lt.s32.totalorder %s1333_s17, %s1333_s17 }
  0x4c   :  { %109 = vst [vmem:[#allocation2 + $0x130] sm:$0xff] %v1628_v0  ;;  %110 = vst [vmem:[#allocation2 + $0x138] sm:$0xff] %v1628_v0  ;;  %1345 = vmatmul.mubr.msk.f32.vlgmr.msra.gmra.mrb[0].mxu0 %vm160_vm0, %v143_v29  ;;  %1347 = vmatmul.mubr.msk.f32.vlgmr.msra.gmra.mrb[0].mxu1 %vm160_vm0, %v1346_v30  ;;  %p1592_p10 = scmp.ne.s32.totalorder %s1333_s17, %s1591_s18  ;;  %p1597_p12 = scmp.lt.s32.totalorder %s1591_s18, %s1591_s18 }
  0x4d   :  { %111 = vst [vmem:[#allocation2 + $0x140] sm:$0xff] %v1628_v0  ;;  %112 = vst [vmem:[#allocation2 + $0x148] sm:$0xff] %v1628_v0  ;;  %378 = vrot.lane.b32.xlu1 %v318_v22, %s1621_s16  ;;  %376 = vrot.lane.b32.xlu0 %v1797_v20, %s1621_s16 }
  0x4e   :  { %113 = vst [vmem:[#allocation2 + $0x150] sm:$0xff] %v1628_v0  ;;  %114 = vst [vmem:[#allocation2 + $0x158] sm:$0xff] %v1628_v0  ;;  %p1598_p13 = por %p1597_p12, %p1596_p11 }
  0x4f   :  { %115 = vst [vmem:[#allocation2 + $0x160] sm:$0xff] %v1628_v0  ;;  %116 = vst [vmem:[#allocation2 + $0x168] sm:$0xff] %v1628_v0 }
  0x50   :  { %117 = vst [vmem:[#allocation2 + $0x170] sm:$0xff] %v1628_v0  ;;  %118 = vst [vmem:[#allocation2 + $0x178] sm:$0xff] %v1628_v0  ;;  %p1599_p0 = pnand %p1598_p13, %p1592_p10 }
  0x51   :  { %119 = vst [vmem:[#allocation2 + $0x180] sm:$0xff] %v1628_v0  ;;  %120 = vst [vmem:[#allocation2 + $0x188] sm:$0xff] %v1628_v0  ;;  %420 = vrot.lane.b32.xlu1 %v315_v23, %s1630_s29  ;;  %418 = vrot.lane.b32.xlu0 %v311_v21, %s1630_s29 }
  0x52   :  { %121 = vst [vmem:[#allocation2 + $0x190] sm:$0xff] %v1628_v0  ;;  %122 = vst [vmem:[#allocation2 + $0x198] sm:$0xff] %v1628_v0 }
  0x53   :  { %123 = vst [vmem:[#allocation2 + $0x1a0] sm:$0xff] %v1628_v0  ;;  %124 = vst [vmem:[#allocation2 + $0x1a8] sm:$0xff] %v1628_v0 }
  0x54   :  { %125 = vst [vmem:[#allocation2 + $0x1b0] sm:$0xff] %v1628_v0  ;;  %126 = vst [vmem:[#allocation2 + $0x1b8] sm:$0xff] %v1628_v0 }
  0x55   :  { %127 = vst [vmem:[#allocation2 + $0x1c0] sm:$0xff] %v1628_v0  ;;  %128 = vst [vmem:[#allocation2 + $0x1c8] sm:$0xff] %v1628_v0  ;;  %424 = vrot.lane.b32.xlu1 %v318_v22, %s1630_s29  ;;  %422 = vrot.lane.b32.xlu0 %v1797_v20, %s1630_s29 }
  0x56   :  { %129 = vst [vmem:[#allocation2 + $0x1d0] sm:$0xff] %v1628_v0  ;;  %130 = vst [vmem:[#allocation2 + $0x1d8] sm:$0xff] %v1628_v0 }
  0x57   :  { %131 = vst [vmem:[#allocation2 + $0x1e0] sm:$0xff] %v1628_v0  ;;  %132 = vst [vmem:[#allocation2 + $0x1e8] sm:$0xff] %v1628_v0 }
  0x58   :  { %133 = vst [vmem:[#allocation2 + $0x1f0] sm:$0xff] %v1628_v0  ;;  %134 = vst [vmem:[#allocation2 + $0x1f8] sm:$0xff] %v1628_v0 }
  0x59   :  { %135 = vst [vmem:[#allocation2 + $0x200] sm:$0xff] %v1628_v0  ;;  %136 = vst [vmem:[#allocation2 + $0x208] sm:$0xff] %v1628_v0  ;;  %466 = vrot.lane.b32.xlu1 %v315_v23, %s1631_s30  ;;  %464 = vrot.lane.b32.xlu0 %v311_v21, %s1631_s30 }
  0x5a   :  { %137 = vst [vmem:[#allocation2 + $0x210] sm:$0xff] %v1628_v0  ;;  %138 = vst [vmem:[#allocation2 + $0x218] sm:$0xff] %v1628_v0 }
  0x5b   :  { %139 = vst [vmem:[#allocation2 + $0x220] sm:$0xff] %v1628_v0  ;;  %140 = vst [vmem:[#allocation2 + $0x228] sm:$0xff] %v1628_v0 }
  0x5c   :  { %141 = vst [vmem:[#allocation2 + $0x230] sm:$0xff] %v1628_v0  ;;  %142 = vst [vmem:[#allocation2 + $0x238] sm:$0xff] %v1628_v0 }
  0x5d   :  { %507 = vst [vmem:[#allocation2 + $0x110] sm:$0xf] %v1797_v20  ;;  %505 = vst [vmem:[#allocation2 + $0x100] sm:$0xf] %v311_v21  ;;  %470 = vrot.lane.b32.xlu1 %v318_v22, %s1631_s30  ;;  %468 = vrot.lane.b32.xlu0 %v1797_v20, %s1631_s30 }
  0x5e   :  { %508 = vst [vmem:[#allocation2 + $0x118] sm:$0xf] %v318_v22  ;;  %506 = vst [vmem:[#allocation2 + $0x108] sm:$0xf] %v315_v23 }
  0x61   :  { %520 = vrot.lane.b32.xlu1 %v315_v23, %s1632_s0  ;;  %518 = vrot.lane.b32.xlu0 %v311_v21, %s1632_s0 }
  0x65   :  { %524 = vrot.lane.b32.xlu1 %v318_v22, %s1632_s0  ;;  %522 = vrot.lane.b32.xlu0 %v1797_v20, %s1632_s0 }
  0x69   :  { %566 = vrot.lane.b32.xlu1 %v315_v23, %s1633_s9  ;;  %564 = vrot.lane.b32.xlu0 %v311_v21, %s1633_s9 }
  0x6d   :  { %570 = vrot.lane.b32.xlu1 %v318_v22, %s1633_s9  ;;  %568 = vrot.lane.b32.xlu0 %v1797_v20, %s1633_s9 }
  0x71   :  { %612 = vrot.lane.b32.xlu1 %v315_v23, %s1634_s10  ;;  %610 = vrot.lane.b32.xlu0 %v311_v21, %s1634_s10 }
  0x75   :  { %616 = vrot.lane.b32.xlu1 %v318_v22, %s1634_s10  ;;  %614 = vrot.lane.b32.xlu0 %v1797_v20, %s1634_s10 }
  0x79   :  { %658 = vrot.lane.b32.xlu1 %v315_v23, %s1635_s11  ;;  %656 = vrot.lane.b32.xlu0 %v311_v21, %s1635_s11 }
  0x7d   :  { %662 = vrot.lane.b32.xlu1 %v318_v22, %s1635_s11  ;;  %660 = vrot.lane.b32.xlu0 %v1797_v20, %s1635_s11  ;;  %v1916_v20 = vld [vmem:[#allocation8 + $0x68] sm:$0xff] }
  0xb2   :  { %v329_v31 = vpop.permute.xlu1 %328  ;;  %v325_v32 = vpop.permute.xlu0 %324 }
  0xb6   :  { %v331_v34 = vpop.permute.xlu1 %330  ;;  %v373_v35 = vpop.permute.xlu0 %372 }
  0xb7   :  { %v335_v44 = vsel %vm334_vm1, %v329_v31, %v331_v34  ;;  %v338_v45 = vsel %vm334_vm1, %v331_v34, %v325_v32 }
  0xb8   :  { %v339_v48 = vmul.f32 %v338_v45, %v1850_v37  ;;  %v342_v49 = vmul.f32 %v335_v44, %v1852_v38 }
  0xba   :  { %v375_v40 = vpop.permute.xlu1 %374  ;;  %v327_v43 = vpop.permute.xlu0 %326  ;;  %343 = vst [vmem:[#allocation2] sm:$0xf] %v339_v48  ;;  %346 = vst [vmem:[#allocation2 + $0x18] sm:$0xf] %v342_v49  ;;  %v1945_v49 = vld [vmem:[#allocation8 + $0xa8] sm:$0xff] }
  0xbb   :  { %v383_v46 = vsel %vm380_vm2, %v373_v35, %v375_v40  ;;  %v336_v47 = vsel %vm334_vm1, %v327_v43, %v329_v31  ;;  %v337_v51 = vsel %vm334_vm1, %v325_v32, %v327_v43 }
  0xbc   :  { %v386_v50 = vmul.f32 %v383_v46, %v1855_v39  ;;  %v340_v52 = vmul.f32 %v337_v51, %v1858_v41  ;;  %v341_v53 = vmul.f32 %v336_v47, %v1860_v42 }
  0xbe   :  { %390 = vst [vmem:[#allocation2 + $0x48] sm:$0xf] %v386_v50  ;;  %344 = vst [vmem:[#allocation2 + $0x8] sm:$0xf] %v340_v52  ;;  %v1947_v50 = vld [vmem:[#allocation8 + $0xb0] sm:$0xff] }
  0xbf   :  { %v379_v55 = vpop.permute.xlu1 %378  ;;  %345 = vst [vmem:[#allocation2 + $0x10] sm:$0xf] %v341_v53  ;;  %v377_v61 = vpop.permute.xlu0 %376 }
  0xc0   :  { %v384_v56 = vsel %vm380_vm2, %v379_v55, %v373_v35  ;;  %v381_v62 = vsel %vm380_vm2, %v377_v61, %v379_v55  ;;  %v382_v63 = vsel %vm380_vm2, %v375_v40, %v377_v61  ;;  %v1935_v35 = vld [vmem:[#allocation8 + $0xa0] sm:$0xff]  ;;  %v1937_v40 = vld [vmem:[#allocation8 + $0xb8] sm:$0xff] }
  0xc1   :  { %v385_v57 = vmul.f32 %v384_v56, %v1877_v54  ;;  %v387_v1 = vmul.f32 %v382_v63, %v1882_v59  ;;  %v388_v2 = vmul.f32 %v381_v62, %v1884_v60  ;;  %v1958_v61 = vld [vmem:[#allocation8 + $0xd8] sm:$0xff] }
  0xc3   :  { %389 = vst [vmem:[#allocation2 + $0x40] sm:$0xf] %v385_v57  ;;  %v421_v58 = vpop.permute.xlu1 %420  ;;  %391 = vst [vmem:[#allocation2 + $0x50] sm:$0xf] %v387_v1  ;;  %v419_v6 = vpop.permute.xlu0 %418 }
  0xc4   :  { %392 = vst [vmem:[#allocation2 + $0x58] sm:$0xf] %v388_v2  ;;  %v429_v7 = vsel %vm426_vm3, %v419_v6, %v421_v58 }
  0xc5   :  { %v432_v10 = vmul.f32 %v429_v7, %v1895_v4  ;;  %v1966_v7 = vld [vmem:[#allocation8 + $0xc8] sm:$0xff] }
  0xc7   :  { %v425_v5 = vpop.permute.xlu1 %424  ;;  %436 = vst [vmem:[#allocation2 + $0x88] sm:$0xf] %v432_v10  ;;  %v423_v14 = vpop.permute.xlu0 %422 }
  0xc8   :  { %v430_v8 = vsel %vm426_vm3, %v425_v5, %v419_v6  ;;  %v427_v15 = vsel %vm426_vm3, %v423_v14, %v425_v5  ;;  %v428_v16 = vsel %vm426_vm3, %v421_v58, %v423_v14  ;;  %v1956_v58 = vld [vmem:[#allocation8 + $0xc0] sm:$0xff] }
  0xc9   :  { %v431_v9 = vmul.f32 %v430_v8, %v1893_v3  ;;  %v433_v17 = vmul.f32 %v428_v16, %v1903_v11  ;;  %v434_v18 = vmul.f32 %v427_v15, %v1905_v12  ;;  %v1968_v8 = vld [vmem:[#allocation8 + $0xd0] sm:$0xff] }
  0xcb   :  { %435 = vst [vmem:[#allocation2 + $0x80] sm:$0xf] %v431_v9  ;;  %v467_v13 = vpop.permute.xlu1 %466  ;;  %437 = vst [vmem:[#allocation2 + $0x90] sm:$0xf] %v433_v17  ;;  %v465_v22 = vpop.permute.xlu0 %464  ;;  %v1977_v17 = vld [vmem:[#allocation8 + $0xe0] sm:$0xff] }
  0xcc   :  { %438 = vst [vmem:[#allocation2 + $0x98] sm:$0xf] %v434_v18  ;;  %v475_v23 = vsel %vm472_vm4, %v465_v22, %v467_v13  ;;  %v1979_v18 = vld [vmem:[#allocation8 + $0xf8] sm:$0xff] }
  0xcd   :  { %v478_v26 = vmul.f32 %v475_v23, %v1916_v20 }
  0xcf   :  { %v471_v21 = vpop.permute.xlu1 %470  ;;  %482 = vst [vmem:[#allocation2 + $0xc8] sm:$0xf] %v478_v26  ;;  %v469_v30 = vpop.permute.xlu0 %468 }
  0xd0   :  { %v476_v24 = vsel %vm472_vm4, %v471_v21, %v465_v22  ;;  %v473_v31 = vsel %vm472_vm4, %v469_v30, %v471_v21  ;;  %v474_v32 = vsel %vm472_vm4, %v467_v13, %v469_v30  ;;  %v1989_v30 = vld [vmem:[#allocation8 + $0xf0] sm:$0xff] }
  0xd1   :  { %v477_v25 = vmul.f32 %v476_v24, %v1914_v19  ;;  %v479_v33 = vmul.f32 %v474_v32, %v1924_v27  ;;  %v480_v34 = vmul.f32 %v473_v31, %v1926_v28 }
  0xd3   :  { %481 = vst [vmem:[#allocation2 + $0xc0] sm:$0xf] %v477_v25  ;;  %v521_v29 = vpop.permute.xlu1 %520  ;;  %483 = vst [vmem:[#allocation2 + $0xd0] sm:$0xf] %v479_v33  ;;  %v519_v44 = vpop.permute.xlu0 %518 }
  0xd4   :  { %484 = vst [vmem:[#allocation2 + $0xd8] sm:$0xf] %v480_v34  ;;  %v529_v45 = vsel %vm526_vm5, %v519_v44, %v521_v29 }
  0xd5   :  { %v531_v47 = vmul.f32 %v529_v45, %v1935_v35  ;;  %v1998_v45 = vld [vmem:[#allocation8 + $0x100] sm:$0xff] }
  0xd7   :  { %v525_v43 = vpop.permute.xlu1 %524  ;;  %535 = vst [vmem:[#allocation2 + $0x140] sm:$0xf] %v531_v47  ;;  %v523_v52 = vpop.permute.xlu0 %522 }
  0xd8   :  { %v530_v46 = vsel %vm526_vm5, %v525_v43, %v519_v44  ;;  %v527_v53 = vsel %vm526_vm5, %v523_v52, %v525_v43  ;;  %v528_v55 = vsel %vm526_vm5, %v521_v29, %v523_v52  ;;  %v1987_v29 = vld [vmem:[#allocation8 + $0xe8] sm:$0xff] }
  0xd9   :  { %v534_v48 = vmul.f32 %v530_v46, %v1937_v40  ;;  %v532_v56 = vmul.f32 %v528_v55, %v1945_v49  ;;  %v533_v57 = vmul.f32 %v527_v53, %v1947_v50  ;;  %v2000_v46 = vld [vmem:[#allocation8 + $0x118] sm:$0xff] }
  0xdb   :  { %538 = vst [vmem:[#allocation2 + $0x158] sm:$0xf] %v534_v48  ;;  %v567_v51 = vpop.permute.xlu1 %566  ;;  %536 = vst [vmem:[#allocation2 + $0x148] sm:$0xf] %v532_v56  ;;  %v565_v63 = vpop.permute.xlu0 %564  ;;  %v2008_v56 = vld [vmem:[#allocation8 + $0x108] sm:$0xff] }
  0xdc   :  { %537 = vst [vmem:[#allocation2 + $0x150] sm:$0xf] %v533_v57  ;;  %v575_v1 = vsel %vm572_vm6, %v565_v63, %v567_v51  ;;  %v2010_v57 = vld [vmem:[#allocation8 + $0x110] sm:$0xff] }
  0xdd   :  { %v577_v5 = vmul.f32 %v575_v1, %v1956_v58 }
  0xdf   :  { %v571_v62 = vpop.permute.xlu1 %570  ;;  %581 = vst [vmem:[#allocation2 + $0x180] sm:$0xf] %v577_v5  ;;  %v569_v10 = vpop.permute.xlu0 %568 }
  0xe0   :  { %v576_v2 = vsel %vm572_vm6, %v571_v62, %v565_v63  ;;  %v573_v13 = vsel %vm572_vm6, %v569_v10, %v571_v62  ;;  %v574_v14 = vsel %vm572_vm6, %v567_v51, %v569_v10 }
  0xe1   :  { %v580_v6 = vmul.f32 %v576_v2, %v1958_v61  ;;  %v578_v15 = vmul.f32 %v574_v14, %v1966_v7  ;;  %v579_v16 = vmul.f32 %v573_v13, %v1968_v8  ;;  %v2052_v14 = vld [vmem:[%s2281_s4] sm:$0xff] }
  0xe3   :  { %584 = vst [vmem:[#allocation2 + $0x198] sm:$0xf] %v580_v6  ;;  %v613_v9 = vpop.permute.xlu1 %612  ;;  %582 = vst [vmem:[#allocation2 + $0x188] sm:$0xf] %v578_v15  ;;  %v611_v22 = vpop.permute.xlu0 %610  ;;  %v777_v15 = vcombine.high %v2052_v14, %v2052_v14 }
  0xe4   :  { %583 = vst [vmem:[#allocation2 + $0x190] sm:$0xf] %v579_v16  ;;  %v621_v23 = vsel %vm618_vm7, %v611_v22, %v613_v9  ;;  %v770_v16 = vld [vmem:[%s2282_s5] sm:$0xf] }
  0xe5   :  { %v623_v25 = vmul.f32 %v621_v23, %v1977_v17  ;;  %1348 = vmatprep.mubr.msk.f32.mxu0 %vm778_vm9, %v777_v15  ;;  %1349 = vmatprep.mubr.msk.f32.mxu1 %vm778_vm9, %v777_v15  ;;  %v701_v15 = vld [vmem:[#allocation2 + $0x18] sm:$0xff] }
  0xe7   :  { %v617_v21 = vpop.permute.xlu1 %616  ;;  %627 = vst [vmem:[#allocation2 + $0x1c0] sm:$0xf] %v623_v25  ;;  %v615_v32 = vpop.permute.xlu0 %614 }
  0xe8   :  { %v622_v24 = vsel %vm618_vm7, %v617_v21, %v611_v22  ;;  %v619_v33 = vsel %vm618_vm7, %v615_v32, %v617_v21  ;;  %v620_v34 = vsel %vm618_vm7, %v613_v9, %v615_v32  ;;  %v1636_v21 = vmov 0  }
  0xe9   :  { %v626_v26 = vmul.f32 %v622_v24, %v1979_v18  ;;  %v624_v43 = vmul.f32 %v620_v34, %v1987_v29  ;;  %v625_v44 = vmul.f32 %v619_v33, %v1989_v30  ;;  %1507 = vset.pattern.permute.xlu0 %v1636_v21 }
  0xeb   :  { %630 = vst [vmem:[#allocation2 + $0x1d8] sm:$0xf] %v626_v26  ;;  %v659_v31 = vpop.permute.xlu1 %658  ;;  %628 = vst [vmem:[#allocation2 + $0x1c8] sm:$0xf] %v624_v43  ;;  %v657_v48 = vpop.permute.xlu0 %656 }
  0xec   :  { %629 = vst [vmem:[#allocation2 + $0x1d0] sm:$0xf] %v625_v44  ;;  %v667_v51 = vsel %vm664_vm8, %v657_v48, %v659_v31 }
  0xed   :  { %v669_v53 = vmul.f32 %v667_v51, %v1998_v45 }
  0xef   :  { %v663_v47 = vpop.permute.xlu1 %662  ;;  %673 = vst [vmem:[#allocation2 + $0x200] sm:$0xf] %v669_v53  ;;  %v661_v62 = vpop.permute.xlu0 %660  ;;  %v699_v53 = vld [vmem:[#allocation2 + $0x8] sm:$0xff] }
  0xf0   :  { %v668_v52 = vsel %vm664_vm8, %v663_v47, %v657_v48  ;;  %v665_v63 = vsel %vm664_vm8, %v661_v62, %v663_v47  ;;  %v666_v1 = vsel %vm664_vm8, %v659_v31, %v661_v62 }
  0xf1   :  { %v672_v55 = vmul.f32 %v668_v52, %v2000_v46  ;;  %v670_v2 = vmul.f32 %v666_v1, %v2008_v56  ;;  %v671_v5 = vmul.f32 %v665_v63, %v2010_v57 }
  0xf3   :  { %676 = vst [vmem:[#allocation2 + $0x218] sm:$0xf] %v672_v55  ;;  %674 = vst [vmem:[#allocation2 + $0x208] sm:$0xf] %v670_v2 }
  0xf4   :  { %675 = vst [vmem:[#allocation2 + $0x210] sm:$0xf] %v671_v5 }
 0x11f   :  { %v230_v6 = vpop.f32.mrb[0].mxu0  ;;  %v306_v9 = vpop.f32.mrb[0].mxu1 }
 0x120   :  { %509 = vst [vmem:[#allocation2 + $0x120] sm:$0xf] %v230_v6  ;;  %347 = vrot.lane.b32.xlu0 %v230_v6, %s1629_s3  ;;  %v232_v10 = vpop.f32.mrb[1].mxu0  ;;  %511 = vst [vmem:[#allocation2 + $0x130] sm:$0xf] %v306_v9  ;;  %v308_v13 = vpop.f32.mrb[1].mxu1 }
 0x121   :  { %510 = vst [vmem:[#allocation2 + $0x128] sm:$0xf] %v232_v10  ;;  %349 = vrot.lane.b32.xlu1 %v232_v10, %s1629_s3  ;;  %512 = vst [vmem:[#allocation2 + $0x138] sm:$0xf] %v308_v13 }
 0x124   :  { %351 = vrot.lane.b32.xlu0 %v306_v9, %s1629_s3 }
 0x125   :  { %353 = vrot.lane.b32.xlu1 %v308_v13, %s1629_s3 }
 0x128   :  { %393 = vrot.lane.b32.xlu0 %v230_v6, %s1621_s16 }
 0x129   :  { %395 = vrot.lane.b32.xlu1 %v232_v10, %s1621_s16 }
 0x12c   :  { %397 = vrot.lane.b32.xlu0 %v306_v9, %s1621_s16 }
 0x12d   :  { %399 = vrot.lane.b32.xlu1 %v308_v13, %s1621_s16 }
 0x130   :  { %439 = vrot.lane.b32.xlu0 %v230_v6, %s1630_s29 }
 0x131   :  { %441 = vrot.lane.b32.xlu1 %v232_v10, %s1630_s29 }
 0x134   :  { %443 = vrot.lane.b32.xlu0 %v306_v9, %s1630_s29 }
 0x135   :  { %445 = vrot.lane.b32.xlu1 %v308_v13, %s1630_s29 }
 0x138   :  { %485 = vrot.lane.b32.xlu0 %v230_v6, %s1631_s30 }
 0x139   :  { %487 = vrot.lane.b32.xlu1 %v232_v10, %s1631_s30 }
 0x13c   :  { %489 = vrot.lane.b32.xlu0 %v306_v9, %s1631_s30 }
 0x13d   :  { %491 = vrot.lane.b32.xlu1 %v308_v13, %s1631_s30 }
 0x140   :  { %539 = vrot.lane.b32.xlu0 %v230_v6, %s1632_s0 }
 0x141   :  { %541 = vrot.lane.b32.xlu1 %v232_v10, %s1632_s0 }
 0x144   :  { %543 = vrot.lane.b32.xlu0 %v306_v9, %s1632_s0 }
 0x145   :  { %545 = vrot.lane.b32.xlu1 %v308_v13, %s1632_s0 }
 0x148   :  { %585 = vrot.lane.b32.xlu0 %v230_v6, %s1633_s9 }
 0x149   :  { %587 = vrot.lane.b32.xlu1 %v232_v10, %s1633_s9 }
 0x14c   :  { %589 = vrot.lane.b32.xlu0 %v306_v9, %s1633_s9 }
 0x14d   :  { %591 = vrot.lane.b32.xlu1 %v308_v13, %s1633_s9 }
 0x150   :  { %631 = vrot.lane.b32.xlu0 %v230_v6, %s1634_s10 }
 0x151   :  { %633 = vrot.lane.b32.xlu1 %v232_v10, %s1634_s10 }
 0x154   :  { %635 = vrot.lane.b32.xlu0 %v306_v9, %s1634_s10 }
 0x155   :  { %637 = vrot.lane.b32.xlu1 %v308_v13, %s1634_s10 }
 0x158   :  { %677 = vrot.lane.b32.xlu0 %v230_v6, %s1635_s11  ;;  %v698_v6 = vld [vmem:[#allocation2] sm:$0xff] }
 0x159   :  { %679 = vrot.lane.b32.xlu1 %v232_v10, %s1635_s11 }
 0x15c   :  { %681 = vrot.lane.b32.xlu0 %v306_v9, %s1635_s11 }
 0x15d   :  { %683 = vrot.lane.b32.xlu1 %v308_v13, %s1635_s11 }
 0x160   :  { %773 = vperm.xlu0 %1507, %v770_v16  }
 0x192   :  { %v348_v22 = vpop.permute.xlu0 %347 }
 0x193   :  { %v350_v23 = vpop.permute.xlu1 %349 }
 0x194   :  { %v357_v24 = vsel %vm334_vm1, %v348_v22, %v350_v23 }
 0x195   :  { %v360_v25 = vmul.f32 %v357_v24, %v1858_v41 }
 0x196   :  { %v352_v26 = vpop.permute.xlu0 %351 }
 0x197   :  { %364 = vst [vmem:[#allocation2 + $0x28] sm:$0xf] %v360_v25  ;;  %v356_v31 = vsel %vm334_vm1, %v350_v23, %v352_v26  ;;  %v354_v32 = vpop.permute.xlu1 %353  ;;  %v700_v23 = vld [vmem:[#allocation2 + $0x10] sm:$0xff] }
 0x198   :  { %v361_v33 = vmul.f32 %v356_v31, %v1860_v42  ;;  %v355_v34 = vsel %vm334_vm1, %v352_v26, %v354_v32  ;;  %v358_v43 = vsel %vm334_vm1, %v354_v32, %v348_v22  ;;  %v707_v26 = vld [vmem:[#allocation2 + $0x48] sm:$0xff] }
 0x199   :  { %v359_v44 = vmul.f32 %v358_v43, %v1850_v37  ;;  %v362_v47 = vmul.f32 %v355_v34, %v1852_v38 }
 0x19a   :  { %365 = vst [vmem:[#allocation2 + $0x30] sm:$0xf] %v361_v33  ;;  %v394_v41 = vpop.permute.xlu0 %393 }
 0x19b   :  { %363 = vst [vmem:[#allocation2 + $0x20] sm:$0xf] %v359_v44  ;;  %366 = vst [vmem:[#allocation2 + $0x38] sm:$0xf] %v362_v47  ;;  %v396_v48 = vpop.permute.xlu1 %395 }
 0x19c   :  { %v403_v51 = vsel %vm380_vm2, %v394_v41, %v396_v48 }
 0x19d   :  { %v406_v42 = vmul.f32 %v403_v51, %v1855_v39 }
 0x19e   :  { %v398_v52 = vpop.permute.xlu0 %397  ;;  %v703_v55 = vld [vmem:[#allocation2 + $0x28] sm:$0xff] }
 0x19f   :  { %410 = vst [vmem:[#allocation2 + $0x68] sm:$0xf] %v406_v42  ;;  %v402_v62 = vsel %vm380_vm2, %v396_v48, %v398_v52  ;;  %v400_v37 = vpop.permute.xlu1 %399  ;;  %v1384_v63 = vpack.c.bf16 %v703_v55, %v699_v53  ;;  %v706_v48 = vld [vmem:[#allocation2 + $0x40] sm:$0xff]  ;;  %v709_v53 = vld [vmem:[#allocation2 + $0x58] sm:$0xff] }
 0x1a0   :  { %v407_v38 = vmul.f32 %v402_v62, %v1882_v59  ;;  %v401_v1 = vsel %vm380_vm2, %v398_v52, %v400_v37  ;;  %v404_v2 = vsel %vm380_vm2, %v400_v37, %v394_v41 }
 0x1a1   :  { %v405_v5 = vmul.f32 %v404_v2, %v1877_v54  ;;  %v408_v39 = vmul.f32 %v401_v1, %v1884_v60  ;;  %1385 = vmatprep.subr.bf16.mxu0 %v1384_v63  ;;  %v704_v9 = vld [vmem:[#allocation2 + $0x30] sm:$0xff]  ;;  %v715_v2 = vld [vmem:[#allocation2 + $0x88] sm:$0xff] }
 0x1a2   :  { %411 = vst [vmem:[#allocation2 + $0x70] sm:$0xf] %v407_v38  ;;  %v440_v10 = vpop.permute.xlu0 %439  ;;  %v702_v13 = vld [vmem:[#allocation2 + $0x20] sm:$0xff]  ;;  %v705_v16 = vld [vmem:[#allocation2 + $0x38] sm:$0xff]  ;;  %v1422_v54 = vpack.c.bf16 %v704_v9, %v700_v23  ;;  %v708_v63 = vld [vmem:[#allocation2 + $0x50] sm:$0xff] }
 0x1a3   :  { %409 = vst [vmem:[#allocation2 + $0x60] sm:$0xf] %v405_v5  ;;  %412 = vst [vmem:[#allocation2 + $0x78] sm:$0xf] %v408_v39  ;;  %v442_v59 = vpop.permute.xlu1 %441  ;;  %v1386_v21 = vpack.c.bf16 %v702_v13, %v698_v6  ;;  %v1420_v22 = vpack.c.bf16 %v705_v16, %v701_v15 }
 0x1a4   :  { %v449_v24 = vsel %vm426_vm3, %v440_v10, %v442_v59 }
 0x1a5   :  { %v452_v60 = vmul.f32 %v449_v24, %v1895_v4  ;;  %1387 = vmatpush1.bf16.msra.mxu0 %v1386_v21  ;;  %1421 = vmatprep.subr.bf16.mxu1 %v1420_v22  ;;  %v717_v24 = vld [vmem:[#allocation2 + $0x98] sm:$0xff] }
 0x1a6   :  { %v444_v25 = vpop.permute.xlu0 %443  ;;  %1423 = vmatpush1.bf16.msra.mxu1 %v1422_v54  ;;  %v711_v31 = vld [vmem:[#allocation2 + $0x68] sm:$0xff] }
 0x1a7   :  { %456 = vst [vmem:[#allocation2 + $0xa8] sm:$0xf] %v452_v60  ;;  %v448_v32 = vsel %vm426_vm3, %v442_v59, %v444_v25  ;;  %v446_v33 = vpop.permute.xlu1 %445  ;;  %v1388_v34 = vpack.c.bf16 %v711_v31, %v707_v26  ;;  %v714_v59 = vld [vmem:[#allocation2 + $0x80] sm:$0xff]  ;;  %v716_v26 = vld [vmem:[#allocation2 + $0x90] sm:$0xff] }
 0x1a8   :  { %v453_v43 = vmul.f32 %v448_v32, %v1903_v11  ;;  %v447_v44 = vsel %vm426_vm3, %v444_v25, %v446_v33  ;;  %v450_v4 = vsel %vm426_vm3, %v446_v33, %v440_v10  ;;  %v723_v33 = vld [vmem:[#allocation2 + $0xc8] sm:$0xff] }
 0x1a9   :  { %v451_v47 = vmul.f32 %v450_v4, %v1893_v3  ;;  %v454_v41 = vmul.f32 %v447_v44, %v1905_v12  ;;  %1389 = vmatprep.subr.bf16.mxu0 %v1388_v34  ;;  %v712_v51 = vld [vmem:[#allocation2 + $0x70] sm:$0xff] }
 0x1aa   :  { %457 = vst [vmem:[#allocation2 + $0xb0] sm:$0xf] %v453_v43  ;;  %v486_v42 = vpop.permute.xlu0 %485  ;;  %v710_v52 = vld [vmem:[#allocation2 + $0x60] sm:$0xff]  ;;  %v713_v55 = vld [vmem:[#allocation2 + $0x78] sm:$0xff]  ;;  %v1426_v3 = vpack.c.bf16 %v712_v51, %v708_v63  ;;  %v731_v51 = vld [vmem:[#allocation2 + $0x108] sm:$0xff] }
 0x1ab   :  { %455 = vst [vmem:[#allocation2 + $0xa0] sm:$0xf] %v451_v47  ;;  %458 = vst [vmem:[#allocation2 + $0xb8] sm:$0xf] %v454_v41  ;;  %v488_v11 = vpop.permute.xlu1 %487  ;;  %v1390_v62 = vpack.c.bf16 %v710_v52, %v706_v48  ;;  %v1424_v37 = vpack.c.bf16 %v713_v55, %v709_v53  ;;  %v722_v48 = vld [vmem:[#allocation2 + $0xc0] sm:$0xff]  ;;  %v725_v55 = vld [vmem:[#allocation2 + $0xd8] sm:$0xff] }
 0x1ac   :  { %v495_v38 = vsel %vm472_vm4, %v486_v42, %v488_v11 }
 0x1ad   :  { %v498_v12 = vmul.f32 %v495_v38, %v1916_v20  ;;  %1391 = vmatpush1.bf16.msra.mxu0 %v1390_v62  ;;  %1425 = vmatprep.subr.bf16.mxu1 %v1424_v37  ;;  %v737_v38 = vld [vmem:[#allocation2 + $0x138] sm:$0xff] }
 0x1ae   :  { %v490_v1 = vpop.permute.xlu0 %489  ;;  %1427 = vmatpush1.bf16.msra.mxu1 %v1426_v3  ;;  %v719_v5 = vld [vmem:[#allocation2 + $0xa8] sm:$0xff] }
 0x1af   :  { %502 = vst [vmem:[#allocation2 + $0xe8] sm:$0xf] %v498_v12  ;;  %v494_v39 = vsel %vm472_vm4, %v488_v11, %v490_v1  ;;  %v492_v6 = vpop.permute.xlu1 %491  ;;  %v1392_v9 = vpack.c.bf16 %v719_v5, %v715_v2  ;;  %v735_v11 = vld [vmem:[#allocation2 + $0x128] sm:$0xff]  ;;  %v724_v2 = vld [vmem:[#allocation2 + $0xd0] sm:$0xff] }
 0x1b0   :  { %v499_v10 = vmul.f32 %v494_v39, %v1924_v27  ;;  %v493_v13 = vsel %vm472_vm4, %v490_v1, %v492_v6  ;;  %v496_v20 = vsel %vm472_vm4, %v492_v6, %v486_v42  ;;  %v733_v42 = vld [vmem:[#allocation2 + $0x118] sm:$0xff]  ;;  %v1400_v5 = vpack.c.bf16 %v735_v11, %v731_v51  ;;  %v730_v39 = vld [vmem:[#allocation2 + $0x100] sm:$0xff] }
 0x1b1   :  { %v497_v15 = vmul.f32 %v496_v20, %v1914_v19  ;;  %v500_v16 = vmul.f32 %v493_v13, %v1926_v28  ;;  %1393 = vmatprep.subr.bf16.mxu0 %v1392_v9  ;;  %v720_v21 = vld [vmem:[#allocation2 + $0xb0] sm:$0xff]  ;;  %v734_v6 = vld [vmem:[#allocation2 + $0x120] sm:$0xff] }
 0x1b2   :  { %503 = vst [vmem:[#allocation2 + $0xf0] sm:$0xf] %v499_v10  ;;  %v540_v22 = vpop.permute.xlu0 %539  ;;  %v718_v23 = vld [vmem:[#allocation2 + $0xa0] sm:$0xff]  ;;  %v721_v54 = vld [vmem:[#allocation2 + $0xb8] sm:$0xff]  ;;  %v1430_v19 = vpack.c.bf16 %v720_v21, %v716_v26  ;;  %v1436_v10 = vpack.c.bf16 %v737_v38, %v733_v42  ;;  %v732_v13 = vld [vmem:[#allocation2 + $0x110] sm:$0xff]  ;;  %v1402_v21 = vpack.c.bf16 %v734_v6, %v730_v39 }
 0x1b3   :  { %501 = vst [vmem:[#allocation2 + $0xe0] sm:$0xf] %v497_v15  ;;  %504 = vst [vmem:[#allocation2 + $0xf8] sm:$0xf] %v500_v16  ;;  %v542_v27 = vpop.permute.xlu1 %541  ;;  %v1394_v60 = vpack.c.bf16 %v718_v23, %v714_v59  ;;  %v1428_v25 = vpack.c.bf16 %v721_v54, %v717_v24  ;;  %v736_v20 = vld [vmem:[#allocation2 + $0x130] sm:$0xff]  ;;  %v738_v54 = vld [vmem:[#allocation2 + $0x140] sm:$0xff] }
 0x1b4   :  { %v549_v31 = vsel %vm526_vm5, %v540_v22, %v542_v27  ;;  %v1438_v24 = vpack.c.bf16 %v736_v20, %v732_v13  ;;  %v739_v26 = vld [vmem:[#allocation2 + $0x148] sm:$0xff]  ;;  %v754_v20 = vld [vmem:[#allocation2 + $0x1c0] sm:$0xff] }
 0x1b5   :  { %v551_v28 = vmul.f32 %v549_v31, %v1935_v35  ;;  %1395 = vmatpush1.bf16.msra.mxu0 %v1394_v60  ;;  %1429 = vmatprep.subr.bf16.mxu1 %v1428_v25 }
 0x1b6   :  { %v544_v32 = vpop.permute.xlu0 %543  ;;  %1431 = vmatpush1.bf16.msra.mxu1 %v1430_v19  ;;  %v727_v34 = vld [vmem:[#allocation2 + $0xe8] sm:$0xff]  ;;  %v741_v19 = vld [vmem:[#allocation2 + $0x158] sm:$0xff] }
 0x1b7   :  { %555 = vst [vmem:[#allocation2 + $0x160] sm:$0xf] %v551_v28  ;;  %v548_v43 = vsel %vm526_vm5, %v542_v27, %v544_v32  ;;  %v546_v44 = vpop.permute.xlu1 %545  ;;  %v1396_v4 = vpack.c.bf16 %v727_v34, %v723_v33  ;;  %v740_v33 = vld [vmem:[#allocation2 + $0x150] sm:$0xff] }
 0x1b8   :  { %v552_v47 = vmul.f32 %v548_v43, %v1945_v49  ;;  %v547_v41 = vsel %vm526_vm5, %v544_v32, %v546_v44  ;;  %v550_v35 = vsel %vm526_vm5, %v546_v44, %v540_v22 }
 0x1b9   :  { %v553_v52 = vmul.f32 %v547_v41, %v1947_v50  ;;  %v554_v53 = vmul.f32 %v550_v35, %v1937_v40  ;;  %1397 = vmatprep.subr.bf16.mxu0 %v1396_v4  ;;  %v728_v62 = vld [vmem:[#allocation2 + $0xf0] sm:$0xff] }
 0x1ba   :  { %556 = vst [vmem:[#allocation2 + $0x168] sm:$0xf] %v552_v47  ;;  %v586_v37 = vpop.permute.xlu0 %585  ;;  %v726_v49 = vld [vmem:[#allocation2 + $0xe0] sm:$0xff]  ;;  %v729_v63 = vld [vmem:[#allocation2 + $0xf8] sm:$0xff]  ;;  %v1434_v40 = vpack.c.bf16 %v728_v62, %v724_v2  ;;  %v747_v62 = vld [vmem:[#allocation2 + $0x188] sm:$0xff] }
 0x1bb   :  { %557 = vst [vmem:[#allocation2 + $0x170] sm:$0xf] %v553_v52  ;;  %558 = vst [vmem:[#allocation2 + $0x178] sm:$0xf] %v554_v53  ;;  %v588_v3 = vpop.permute.xlu1 %587  ;;  %v1398_v12 = vpack.c.bf16 %v726_v49, %v722_v48  ;;  %v1432_v1 = vpack.c.bf16 %v729_v63, %v725_v55  ;;  %v746_v53 = vld [vmem:[#allocation2 + $0x180] sm:$0xff]  ;;  %v749_v49 = vld [vmem:[#allocation2 + $0x198] sm:$0xff] }
 0x1bc   :  { %v595_v50 = vsel %vm572_vm6, %v586_v37, %v588_v3 }
 0x1bd   :  { %v597_v9 = vmul.f32 %v595_v50, %v1956_v58  ;;  %1399 = vmatpush1.bf16.msra.mxu0 %v1398_v12  ;;  %1433 = vmatprep.subr.bf16.mxu1 %v1432_v1 }
 0x1be   :  { %v590_v15 = vpop.permute.xlu0 %589  ;;  %1401 = vmatprep.subr.bf16.mxu0 %v1400_v5  ;;  %1435 = vmatpush1.bf16.msra.mxu1 %v1434_v40  ;;  %v742_v27 = vld [vmem:[#allocation2 + $0x160] sm:$0xff] }
 0x1bf   :  { %601 = vst [vmem:[#allocation2 + $0x1a0] sm:$0xf] %v597_v9  ;;  %v594_v16 = vsel %vm572_vm6, %v588_v3, %v590_v15  ;;  %v592_v59 = vpop.permute.xlu1 %591  ;;  %1437 = vmatprep.subr.bf16.mxu1 %v1436_v10  ;;  %v1406_v44 = vpack.c.bf16 %v742_v27, %v738_v54 }
 0x1c0   :  { %v598_v22 = vmul.f32 %v594_v16, %v1966_v7  ;;  %v593_v58 = vsel %vm572_vm6, %v590_v15, %v592_v59  ;;  %v596_v23 = vsel %vm572_vm6, %v592_v59, %v586_v37  ;;  %v755_v59 = vld [vmem:[#allocation2 + $0x1c8] sm:$0xff] }
 0x1c1   :  { %v599_v60 = vmul.f32 %v593_v58, %v1968_v8  ;;  %v600_v25 = vmul.f32 %v596_v23, %v1958_v61  ;;  %1403 = vmatpush1.bf16.msra.mxu0 %v1402_v21  ;;  %v743_v31 = vld [vmem:[#allocation2 + $0x168] sm:$0xff] }
 0x1c2   :  { %602 = vst [vmem:[#allocation2 + $0x1a8] sm:$0xf] %v598_v22  ;;  %v632_v28 = vpop.permute.xlu0 %631  ;;  %1439 = vmatpush1.bf16.msra.mxu1 %v1438_v24  ;;  %v1404_v7 = vpack.c.bf16 %v743_v31, %v739_v26  ;;  %v745_v32 = vld [vmem:[#allocation2 + $0x178] sm:$0xff]  ;;  %v744_v34 = vld [vmem:[#allocation2 + $0x170] sm:$0xff] }
 0x1c3   :  { %603 = vst [vmem:[#allocation2 + $0x1b0] sm:$0xf] %v599_v60  ;;  %604 = vst [vmem:[#allocation2 + $0x1b8] sm:$0xf] %v600_v25  ;;  %v634_v43 = vpop.permute.xlu1 %633  ;;  %v1440_v4 = vpack.c.bf16 %v745_v32, %v741_v19  ;;  %v1442_v47 = vpack.c.bf16 %v744_v34, %v740_v33  ;;  %v757_v22 = vld [vmem:[#allocation2 + $0x1d8] sm:$0xff]  ;;  %v756_v24 = vld [vmem:[#allocation2 + $0x1d0] sm:$0xff] }
 0x1c4   :  { %v641_v61 = vsel %vm618_vm7, %v632_v28, %v634_v43  ;;  %1405 = vmatprep.subr.bf16.mxu0 %v1404_v7  ;;  %v765_v31 = vld [vmem:[#allocation2 + $0x218] sm:$0xff]  ;;  %v764_v7 = vld [vmem:[#allocation2 + $0x210] sm:$0xff] }
 0x1c5   :  { %v643_v8 = vmul.f32 %v641_v61, %v1977_v17  ;;  %1407 = vmatpush1.bf16.msra.mxu0 %v1406_v44  ;;  %1441 = vmatprep.subr.bf16.mxu1 %v1440_v4 }
 0x1c6   :  { %v636_v41 = vpop.permute.xlu0 %635  ;;  %1443 = vmatpush1.bf16.msra.mxu1 %v1442_v47  ;;  %v750_v55 = vld [vmem:[#allocation2 + $0x1a0] sm:$0xff] }
 0x1c7   :  { %647 = vst [vmem:[#allocation2 + $0x1e0] sm:$0xf] %v643_v8  ;;  %v640_v35 = vsel %vm618_vm7, %v634_v43, %v636_v41  ;;  %v638_v48 = vpop.permute.xlu1 %637  ;;  %v1410_v2 = vpack.c.bf16 %v750_v55, %v746_v53 }
 0x1c8   :  { %v644_v51 = vmul.f32 %v640_v35, %v1987_v29  ;;  %v639_v42 = vsel %vm618_vm7, %v636_v41, %v638_v48  ;;  %v642_v52 = vsel %vm618_vm7, %v638_v48, %v632_v28  ;;  %v748_v29 = vld [vmem:[#allocation2 + $0x190] sm:$0xff] }
 0x1c9   :  { %v645_v17 = vmul.f32 %v639_v42, %v1989_v30  ;;  %v646_v11 = vmul.f32 %v642_v52, %v1979_v18  ;;  %v751_v37 = vld [vmem:[#allocation2 + $0x1a8] sm:$0xff] }
 0x1ca   :  { %648 = vst [vmem:[#allocation2 + $0x1e8] sm:$0xf] %v644_v51  ;;  %v678_v63 = vpop.permute.xlu0 %677  ;;  %v1408_v38 = vpack.c.bf16 %v751_v37, %v747_v62  ;;  %v753_v3 = vld [vmem:[#allocation2 + $0x1b8] sm:$0xff]  ;;  %v752_v12 = vld [vmem:[#allocation2 + $0x1b0] sm:$0xff] }
 0x1cb   :  { %649 = vst [vmem:[#allocation2 + $0x1f0] sm:$0xf] %v645_v17  ;;  %650 = vst [vmem:[#allocation2 + $0x1f8] sm:$0xf] %v646_v11  ;;  %v680_v1 = vpop.permute.xlu1 %679  ;;  %v1444_v50 = vpack.c.bf16 %v753_v3, %v749_v49  ;;  %v1446_v5 = vpack.c.bf16 %v752_v12, %v748_v29  ;;  %v1512_v3 = vld [vmem:[#allocation8 + $0x10] sm:$0xff]  ;;  %v927_v12 = vld [vmem:[#allocation8] sm:$0xff] }
 0x1cc   :  { %v687_v30 = vsel %vm664_vm8, %v678_v63, %v680_v1  ;;  %1409 = vmatprep.subr.bf16.mxu0 %v1408_v38 }
 0x1cd   :  { %v689_v18 = vmul.f32 %v687_v30, %v1998_v45  ;;  %1411 = vmatpush1.bf16.msra.mxu0 %v1410_v2  ;;  %1445 = vmatprep.subr.bf16.mxu1 %v1444_v50 }
 0x1ce   :  { %v682_v40 = vpop.permute.xlu0 %681  ;;  %1447 = vmatpush1.bf16.msra.mxu1 %v1446_v5  ;;  %v758_v15 = vld [vmem:[#allocation2 + $0x1e0] sm:$0xff] }
 0x1cf   :  { %693 = vst [vmem:[#allocation2 + $0x220] sm:$0xf] %v689_v18  ;;  %v686_v39 = vsel %vm664_vm8, %v680_v1, %v682_v40  ;;  %v684_v6 = vpop.permute.xlu1 %683  ;;  %v1414_v54 = vpack.c.bf16 %v758_v15, %v754_v20  ;;  %v930_v1 = vld [vmem:[#allocation8 + $0x18] sm:$0xff]  ;;  %v1513_v15 = vld [vmem:[#allocation8 + $0x30] sm:$0xff] }
 0x1d0   :  { %v690_v9 = vmul.f32 %v686_v39, %v2008_v56  ;;  %v685_v10 = vsel %vm664_vm8, %v682_v40, %v684_v6  ;;  %v688_v13 = vsel %vm664_vm8, %v684_v6, %v678_v63  ;;  %v1511_v63 = vld [vmem:[#allocation8 + $0x8] sm:$0xff] }
 0x1d1   :  { %v691_v45 = vmul.f32 %v685_v10, %v2010_v57  ;;  %v692_v16 = vmul.f32 %v688_v13, %v2000_v46  ;;  %v759_v21 = vld [vmem:[#allocation2 + $0x1e8] sm:$0xff]  ;;  %v762_v57 = vld [vmem:[#allocation2 + $0x200] sm:$0xff]  ;;  %v952_v39 = vld [vmem:[#allocation8 + $0x28] sm:$0xff] }
 0x1d2   :  { %694 = vst [vmem:[#allocation2 + $0x228] sm:$0xf] %v690_v9  ;;  %v1412_v58 = vpack.c.bf16 %v759_v21, %v755_v59  ;;  %v761_v23 = vld [vmem:[#allocation2 + $0x1f8] sm:$0xff]  ;;  %v760_v56 = vld [vmem:[#allocation2 + $0x1f0] sm:$0xff]  ;;  %v763_v46 = vld [vmem:[#allocation2 + $0x208] sm:$0xff] }
 0x1d3   :  { %695 = vst [vmem:[#allocation2 + $0x230] sm:$0xf] %v691_v45  ;;  %696 = vst [vmem:[#allocation2 + $0x238] sm:$0xf] %v692_v16  ;;  %v1448_v27 = vpack.c.bf16 %v761_v23, %v757_v22  ;;  %v1450_v60 = vpack.c.bf16 %v760_v56, %v756_v24  ;;  %v1515_v24 = vld [vmem:[#allocation8 + $0x38] sm:$0xff] }
 0x1d4   :  { %1413 = vmatprep.subr.bf16.mxu0 %v1412_v58  ;;  %v1514_v58 = vld [vmem:[#allocation8 + $0x20] sm:$0xff] }
 0x1d5   :  { %1415 = vmatpush1.bf16.msra.mxu0 %v1414_v54  ;;  %1449 = vmatprep.subr.bf16.mxu1 %v1448_v27 }
 0x1d6   :  { %1451 = vmatpush1.bf16.msra.mxu1 %v1450_v60  ;;  %v766_v25 = vld [vmem:[#allocation2 + $0x220] sm:$0xff] }
 0x1d7   :  { %v1418_v33 = vpack.c.bf16 %v766_v25, %v762_v57  ;;  %v1516_v25 = vld [vmem:[#allocation8 + $0x48] sm:$0xff] }
 0x1d9   :  { %v767_v26 = vld [vmem:[#allocation2 + $0x228] sm:$0xff] }
 0x1da   :  { %v1416_v19 = vpack.c.bf16 %v767_v26, %v763_v46  ;;  %v769_v28 = vld [vmem:[#allocation2 + $0x238] sm:$0xff]  ;;  %v768_v32 = vld [vmem:[#allocation2 + $0x230] sm:$0xff]  ;;  %v1517_v26 = vld [vmem:[#allocation8 + $0x50] sm:$0xff] }
 0x1db   :  { %v1452_v34 = vpack.c.bf16 %v769_v28, %v765_v31  ;;  %v1454_v43 = vpack.c.bf16 %v768_v32, %v764_v7 }
 0x1dc   :  { %1417 = vmatprep.subr.bf16.mxu0 %v1416_v19 }
 0x1dd   :  { %1419 = vmatpush1.bf16.msra.mxu0 %v1418_v33  ;;  %1453 = vmatprep.subr.bf16.mxu1 %v1452_v34 }
 0x1de   :  { %1455 = vmatpush1.bf16.msra.mxu1 %v1454_v43 }
 0x1df   :  { %v774_v44 = vpop.permute.xlu0 %773 }
 0x1e0   :  { %846 = vmatmul.mubr.f32.vlgmr.msra.gmra.mrb[2].mxu0 %v2052_v14 }
 0x1e1   :  { %917 = vmatmul.mubr.f32.vlgmr.msra.gmra.mrb[2].mxu1 %v2052_v14  ;;  %1234 = vmatprep.mubr.f32.mxu0 %v1628_v0 }
 0x1e2   :  { %1305 = vmatprep.mubr.f32.mxu1 %v1628_v0  ;;  %v1160_v0 = vld [vmem:[%s2284_s7] sm:$0xf] }
 0x2b3   :  { %v847_v4 = vpop.f32.mrb[2].mxu0 }
 0x2b4   :  { %v848_v47 = vadd.f32 %v847_v4, %v774_v44  ;;  %v849_v61 = vpop.f32.mrb[3].mxu0  ;;  %v918_v8 = vpop.f32.mrb[2].mxu1 }
 0x2b5   :  { %v850_v41 = vadd.f32 %v849_v61, %v774_v44  ;;  %v919_v35 = vadd.f32 %v918_v8, %v774_v44  ;;  %v920_v48 = vpop.f32.mrb[3].mxu1 }
 0x2b6   :  { %v923_v51 = vmax.f32 %v848_v47, 0.0  ;;  %v921_v42 = vadd.f32 %v920_v48, %v774_v44  ;;  %v1518_v44 = vld [vmem:[#allocation8 + $0x40] sm:$0xff]  ;;  %v1519_v47 = vld [vmem:[#allocation8 + $0x58] sm:$0xff] }
 0x2b7   :  { %v924_v52 = vmax.f32 %v850_v41, 0.0  ;;  %v925_v53 = vmax.f32 %v919_v35, 0.0 }
 0x2b8   :  { %1023 = vst [vmem:[#allocation2 + $0x80] sm:$0xf] %v923_v51  ;;  %v926_v55 = vmax.f32 %v921_v42, 0.0  ;;  %931 = vrot.lane.b32.xlu1 %v923_v51, %s1629_s3 }
 0x2b9   :  { %1024 = vst [vmem:[#allocation2 + $0x88] sm:$0xf] %v924_v52  ;;  %1025 = vst [vmem:[#allocation2 + $0x90] sm:$0xf] %v925_v53  ;;  %935 = vrot.lane.b32.xlu0 %v925_v53, %s1629_s3 }
 0x2ba   :  { %1026 = vst [vmem:[#allocation2 + $0x98] sm:$0xf] %v926_v55 }
 0x2bc   :  { %933 = vrot.lane.b32.xlu1 %v924_v52, %s1629_s3 }
 0x2bd   :  { %955 = vrot.lane.b32.xlu0 %v923_v51, %s1621_s16 }
 0x2c0   :  { %937 = vrot.lane.b32.xlu1 %v926_v55, %s1629_s3 }
 0x2c1   :  { %959 = vrot.lane.b32.xlu0 %v925_v53, %s1621_s16 }
 0x2c4   :  { %957 = vrot.lane.b32.xlu1 %v924_v52, %s1621_s16 }
 0x2c5   :  { %979 = vrot.lane.b32.xlu0 %v923_v51, %s1630_s29 }
 0x2c8   :  { %961 = vrot.lane.b32.xlu1 %v926_v55, %s1621_s16 }
 0x2c9   :  { %983 = vrot.lane.b32.xlu0 %v925_v53, %s1630_s29 }
 0x2cc   :  { %981 = vrot.lane.b32.xlu1 %v924_v52, %s1630_s29 }
 0x2cd   :  { %1003 = vrot.lane.b32.xlu0 %v923_v51, %s1631_s30 }
 0x2d0   :  { %985 = vrot.lane.b32.xlu1 %v926_v55, %s1630_s29 }
 0x2d1   :  { %1007 = vrot.lane.b32.xlu0 %v925_v53, %s1631_s30 }
 0x2d4   :  { %1005 = vrot.lane.b32.xlu1 %v924_v52, %s1631_s30 }
 0x2d5   :  { %1031 = vrot.lane.b32.xlu0 %v923_v51, %s1632_s0 }
 0x2d8   :  { %1009 = vrot.lane.b32.xlu1 %v926_v55, %s1631_s30 }
 0x2d9   :  { %1035 = vrot.lane.b32.xlu0 %v925_v53, %s1632_s0 }
 0x2dc   :  { %1033 = vrot.lane.b32.xlu1 %v924_v52, %s1632_s0 }
 0x2dd   :  { %1055 = vrot.lane.b32.xlu0 %v923_v51, %s1633_s9 }
 0x2e0   :  { %1037 = vrot.lane.b32.xlu1 %v926_v55, %s1632_s0 }
 0x2e1   :  { %1059 = vrot.lane.b32.xlu0 %v925_v53, %s1633_s9 }
 0x2e4   :  { %1057 = vrot.lane.b32.xlu1 %v924_v52, %s1633_s9 }
 0x2e5   :  { %1079 = vrot.lane.b32.xlu0 %v923_v51, %s1634_s10 }
 0x2e8   :  { %1061 = vrot.lane.b32.xlu1 %v926_v55, %s1633_s9 }
 0x2e9   :  { %1083 = vrot.lane.b32.xlu0 %v925_v53, %s1634_s10 }
 0x2ec   :  { %1081 = vrot.lane.b32.xlu1 %v924_v52, %s1634_s10 }
 0x2ed   :  { %1103 = vrot.lane.b32.xlu0 %v923_v51, %s1635_s11 }
 0x2f0   :  { %1085 = vrot.lane.b32.xlu1 %v926_v55, %s1634_s10 }
 0x2f1   :  { %1107 = vrot.lane.b32.xlu0 %v925_v53, %s1635_s11 }
 0x2f4   :  { %1105 = vrot.lane.b32.xlu1 %v924_v52, %s1635_s11 }
 0x2f5   :  { %1163 = vperm.xlu0 %1507, %v1160_v0  }
 0x2f8   :  { %1109 = vrot.lane.b32.xlu1 %v926_v55, %s1635_s11 }
 0x32a   :  { %v932_v14 = vpop.permute.xlu1 %931 }
 0x32b   :  { %v936_v17 = vpop.permute.xlu0 %935 }
 0x32e   :  { %v934_v11 = vpop.permute.xlu1 %933 }
 0x32f   :  { %v940_v62 = vsel %vm334_vm1, %v934_v11, %v936_v17  ;;  %v941_v37 = vsel %vm334_vm1, %v932_v14, %v934_v11  ;;  %v956_v49 = vpop.permute.xlu0 %955 }
 0x330   :  { %v944_v38 = vmul.f32 %v1511_v63, %v941_v37  ;;  %v945_v29 = vmul.f32 %v1512_v3, %v940_v62  ;;  %v1520_v62 = vld [vmem:[#allocation8 + $0x68] sm:$0xff]  ;;  %v1002_v3 = vld [vmem:[#allocation8 + $0x78] sm:$0xff] }
 0x332   :  { %948 = vst [vmem:[#allocation2 + $0x8] sm:$0xf] %v944_v38  ;;  %949 = vst [vmem:[#allocation2 + $0x10] sm:$0xf] %v945_v29  ;;  %v938_v2 = vpop.permute.xlu1 %937  ;;  %v999_v38 = vld [vmem:[#allocation8 + $0x60] sm:$0xff] }
 0x333   :  { %v939_v50 = vsel %vm334_vm1, %v936_v17, %v938_v2  ;;  %v942_v5 = vsel %vm334_vm1, %v938_v2, %v932_v14  ;;  %v960_v30 = vpop.permute.xlu0 %959 }
 0x334   :  { %v943_v18 = vmul.f32 %v942_v5, %v927_v12  ;;  %v946_v40 = vmul.f32 %v939_v50, %v930_v1 }
 0x336   :  { %947 = vst [vmem:[#allocation2] sm:$0xf] %v943_v18  ;;  %950 = vst [vmem:[#allocation2 + $0x18] sm:$0xf] %v946_v40  ;;  %v958_v6 = vpop.permute.xlu1 %957 }
 0x337   :  { %v964_v9 = vsel %vm380_vm2, %v958_v6, %v960_v30  ;;  %v965_v10 = vsel %vm380_vm2, %v956_v49, %v958_v6  ;;  %v980_v13 = vpop.permute.xlu0 %979 }
 0x338   :  { %v968_v20 = vmul.f32 %v965_v10, %v952_v39  ;;  %v969_v45 = vmul.f32 %v1513_v15, %v964_v9  ;;  %v1522_v10 = vld [vmem:[#allocation8 + $0xa8] sm:$0xff] }
 0x339   :  { %v1125_v19 = vld [vmem:[#allocation2 + $0x8] sm:$0xff]  ;;  %v1126_v55 = vld [vmem:[#allocation2 + $0x10] sm:$0xff] }
 0x33a   :  { %972 = vst [vmem:[#allocation2 + $0x28] sm:$0xf] %v968_v20  ;;  %973 = vst [vmem:[#allocation2 + $0x30] sm:$0xf] %v969_v45  ;;  %v962_v16 = vpop.permute.xlu1 %961  ;;  %v1030_v20 = vld [vmem:[#allocation8 + $0xb8] sm:$0xff] }
 0x33b   :  { %v963_v59 = vsel %vm380_vm2, %v960_v30, %v962_v16  ;;  %v966_v21 = vsel %vm380_vm2, %v962_v16, %v956_v49  ;;  %v984_v22 = vpop.permute.xlu0 %983  ;;  %v1521_v49 = vld [vmem:[#allocation8 + $0x70] sm:$0xff]  ;;  %v1027_v30 = vld [vmem:[#allocation8 + $0xa0] sm:$0xff] }
 0x33c   :  { %v967_v23 = vmul.f32 %v1514_v58, %v966_v21  ;;  %v970_v56 = vmul.f32 %v1515_v24, %v963_v59 }
 0x33d   :  { %v1124_v8 = vld [vmem:[#allocation2] sm:$0xff]  ;;  %v1127_v48 = vld [vmem:[#allocation2 + $0x18] sm:$0xff] }
 0x33e   :  { %971 = vst [vmem:[#allocation2 + $0x20] sm:$0xf] %v967_v23  ;;  %974 = vst [vmem:[#allocation2 + $0x38] sm:$0xf] %v970_v56  ;;  %v982_v54 = vpop.permute.xlu1 %981  ;;  %v1523_v23 = vld [vmem:[#allocation8 + $0xb0] sm:$0xff] }
 0x33f   :  { %v988_v27 = vsel %vm426_vm3, %v982_v54, %v984_v22  ;;  %v989_v60 = vsel %vm426_vm3, %v980_v13, %v982_v54  ;;  %v1004_v57 = vpop.permute.xlu0 %1003  ;;  %v1051_v54 = vld [vmem:[#allocation8 + $0xc0] sm:$0xff] }
 0x340   :  { %v992_v46 = vmul.f32 %v1516_v25, %v989_v60  ;;  %v993_v31 = vmul.f32 %v1517_v26, %v988_v27 }
 0x341   :  { %v1129_v28 = vld [vmem:[#allocation2 + $0x28] sm:$0xff]  ;;  %v1130_v41 = vld [vmem:[#allocation2 + $0x30] sm:$0xff] }
 0x342   :  { %996 = vst [vmem:[#allocation2 + $0x48] sm:$0xf] %v992_v46  ;;  %997 = vst [vmem:[#allocation2 + $0x50] sm:$0xf] %v993_v31  ;;  %v986_v7 = vpop.permute.xlu1 %985  ;;  %v1456_v32 = vpack.c.bf16 %v1129_v28, %v1125_v19  ;;  %v1474_v11 = vpack.c.bf16 %v1130_v41, %v1126_v55  ;;  %v1054_v41 = vld [vmem:[#allocation8 + $0xd8] sm:$0xff] }
 0x343   :  { %v987_v33 = vsel %vm426_vm3, %v984_v22, %v986_v7  ;;  %v990_v34 = vsel %vm426_vm3, %v986_v7, %v980_v13  ;;  %v1008_v43 = vpop.permute.xlu0 %1007 }
 0x344   :  { %v991_v4 = vmul.f32 %v1518_v44, %v990_v34  ;;  %v994_v61 = vmul.f32 %v1519_v47, %v987_v33  ;;  %1457 = vmatprep.subr.bf16.mxu0 %v1456_v32  ;;  %v1524_v44 = vld [vmem:[#allocation8 + $0xc8] sm:$0xff]  ;;  %v1053_v47 = vld [vmem:[#allocation8 + $0xd0] sm:$0xff] }
 0x345   :  { %v1128_v35 = vld [vmem:[#allocation2 + $0x20] sm:$0xff]  ;;  %v1131_v51 = vld [vmem:[#allocation2 + $0x38] sm:$0xff] }
 0x346   :  { %995 = vst [vmem:[#allocation2 + $0x40] sm:$0xf] %v991_v4  ;;  %998 = vst [vmem:[#allocation2 + $0x58] sm:$0xf] %v994_v61  ;;  %v1006_v42 = vpop.permute.xlu1 %1005  ;;  %v1458_v52 = vpack.c.bf16 %v1128_v35, %v1124_v8  ;;  %v1472_v53 = vpack.c.bf16 %v1131_v51, %v1127_v48  ;;  %v1141_v61 = vld [vmem:[#allocation2 + $0x88] sm:$0xff]  ;;  %v1140_v8 = vld [vmem:[#allocation2 + $0x80] sm:$0xff] }
 0x347   :  { %v1012_v0 = vsel %vm472_vm4, %v1006_v42, %v1008_v43  ;;  %v1013_v14 = vsel %vm472_vm4, %v1004_v57, %v1006_v42  ;;  %v1032_v17 = vpop.permute.xlu0 %1031 }
 0x348   :  { %v1016_v37 = vmul.f32 %v1520_v62, %v1013_v14  ;;  %v1017_v63 = vmul.f32 %v1521_v49, %v1012_v0  ;;  %1459 = vmatpush1.bf16.msra.mxu0 %v1458_v52  ;;  %1473 = vmatprep.subr.bf16.mxu1 %v1472_v53  ;;  %v1143_v62 = vld [vmem:[#allocation2 + $0x98] sm:$0xff] }
 0x349   :  { %1475 = vmatpush1.bf16.msra.mxu1 %v1474_v11  ;;  %v1133_v15 = vld [vmem:[#allocation2 + $0x48] sm:$0xff]  ;;  %v1134_v28 = vld [vmem:[#allocation2 + $0x50] sm:$0xff]  ;;  %v1076_v49 = vld [vmem:[#allocation8 + $0xe8] sm:$0xff] }
 0x34a   :  { %1020 = vst [vmem:[#allocation2 + $0x68] sm:$0xf] %v1016_v37  ;;  %1021 = vst [vmem:[#allocation2 + $0x70] sm:$0xf] %v1017_v63  ;;  %v1010_v29 = vpop.permute.xlu1 %1009  ;;  %v1075_v11 = vld [vmem:[#allocation8 + $0xe0] sm:$0xff] }
 0x34b   :  { %v1011_v12 = vsel %vm472_vm4, %v1008_v43, %v1010_v29  ;;  %v1014_v1 = vsel %vm472_vm4, %v1010_v29, %v1004_v57  ;;  %v1036_v2 = vpop.permute.xlu0 %1035  ;;  %v1142_v37 = vld [vmem:[#allocation2 + $0x90] sm:$0xff] }
 0x34c   :  { %v1015_v50 = vmul.f32 %v1014_v1, %v999_v38  ;;  %v1018_v5 = vmul.f32 %v1011_v12, %v1002_v3 }
 0x34d   :  { %v1132_v27 = vld [vmem:[#allocation2 + $0x40] sm:$0xff]  ;;  %v1135_v25 = vld [vmem:[#allocation2 + $0x58] sm:$0xff] }
 0x34e   :  { %1019 = vst [vmem:[#allocation2 + $0x60] sm:$0xf] %v1015_v50  ;;  %1022 = vst [vmem:[#allocation2 + $0x78] sm:$0xf] %v1018_v5  ;;  %v1034_v18 = vpop.permute.xlu1 %1033 }
 0x34f   :  { %v1040_v40 = vsel %vm526_vm5, %v1034_v18, %v1036_v2  ;;  %v1041_v39 = vsel %vm526_vm5, %v1032_v17, %v1034_v18  ;;  %v1056_v6 = vpop.permute.xlu0 %1055  ;;  %v1077_v18 = vld [vmem:[#allocation8 + $0xf0] sm:$0xff] }
 0x350   :  { %v1043_v9 = vmul.f32 %v1041_v39, %v1027_v30  ;;  %v1044_v13 = vmul.f32 %v1522_v10, %v1040_v40  ;;  %v1078_v40 = vld [vmem:[#allocation8 + $0xf8] sm:$0xff] }
 0x351   :  { %v1137_v45 = vld [vmem:[#allocation2 + $0x68] sm:$0xff]  ;;  %v1138_v60 = vld [vmem:[#allocation2 + $0x70] sm:$0xff] }
 0x352   :  { %1047 = vst [vmem:[#allocation2 + $0xa0] sm:$0xf] %v1043_v9  ;;  %1048 = vst [vmem:[#allocation2 + $0xa8] sm:$0xf] %v1044_v13  ;;  %v1038_v16 = vpop.permute.xlu1 %1037  ;;  %v1460_v59 = vpack.c.bf16 %v1137_v45, %v1133_v15  ;;  %v1478_v34 = vpack.c.bf16 %v1138_v60, %v1134_v28  ;;  %v1100_v15 = vld [vmem:[#allocation8 + $0x108] sm:$0xff] }
 0x353   :  { %v1039_v21 = vsel %vm526_vm5, %v1036_v2, %v1038_v16  ;;  %v1042_v22 = vsel %vm526_vm5, %v1038_v16, %v1032_v17  ;;  %v1060_v58 = vpop.permute.xlu0 %1059 }
 0x354   :  { %v1045_v24 = vmul.f32 %v1523_v23, %v1039_v21  ;;  %v1046_v56 = vmul.f32 %v1042_v22, %v1030_v20  ;;  %1461 = vmatprep.subr.bf16.mxu0 %v1460_v59  ;;  %v1099_v20 = vld [vmem:[#allocation8 + $0x100] sm:$0xff]  ;;  %v1101_v23 = vld [vmem:[#allocation8 + $0x110] sm:$0xff] }
 0x355   :  { %v1136_v57 = vld [vmem:[#allocation2 + $0x60] sm:$0xff]  ;;  %v1139_v46 = vld [vmem:[#allocation2 + $0x78] sm:$0xff] }
 0x356   :  { %1049 = vst [vmem:[#allocation2 + $0xb0] sm:$0xf] %v1045_v24  ;;  %1050 = vst [vmem:[#allocation2 + $0xb8] sm:$0xf] %v1046_v56  ;;  %v1058_v26 = vpop.permute.xlu1 %1057  ;;  %v1462_v31 = vpack.c.bf16 %v1136_v57, %v1132_v27  ;;  %v1476_v19 = vpack.c.bf16 %v1139_v46, %v1135_v25  ;;  %v1102_v24 = vld [vmem:[#allocation8 + $0x118] sm:$0xff] }
 0x357   :  { %v1064_v7 = vsel %vm572_vm6, %v1058_v26, %v1060_v58  ;;  %v1065_v32 = vsel %vm572_vm6, %v1056_v6, %v1058_v26  ;;  %v1080_v33 = vpop.permute.xlu0 %1079 }
 0x358   :  { %v1067_v43 = vmul.f32 %v1065_v32, %v1051_v54  ;;  %v1068_v4 = vmul.f32 %v1524_v44, %v1064_v7  ;;  %1463 = vmatpush1.bf16.msra.mxu0 %v1462_v31  ;;  %1477 = vmatprep.subr.bf16.mxu1 %v1476_v19 }
 0x359   :  { %1479 = vmatpush1.bf16.msra.mxu1 %v1478_v34  ;;  %v1145_v35 = vld [vmem:[#allocation2 + $0xa8] sm:$0xff]  ;;  %v1144_v48 = vld [vmem:[#allocation2 + $0xa0] sm:$0xff] }
 0x35a   :  { %1071 = vst [vmem:[#allocation2 + $0xc0] sm:$0xf] %v1067_v43  ;;  %1072 = vst [vmem:[#allocation2 + $0xc8] sm:$0xf] %v1068_v4  ;;  %v1062_v51 = vpop.permute.xlu1 %1061  ;;  %v1464_v42 = vpack.c.bf16 %v1145_v35, %v1141_v61  ;;  %v1466_v52 = vpack.c.bf16 %v1144_v48, %v1140_v8 }
 0x35b   :  { %v1063_v53 = vsel %vm572_vm6, %v1060_v58, %v1062_v51  ;;  %v1066_v55 = vsel %vm572_vm6, %v1062_v51, %v1056_v6  ;;  %v1084_v0 = vpop.permute.xlu0 %1083 }
 0x35c   :  { %v1069_v14 = vmul.f32 %v1063_v53, %v1053_v47  ;;  %v1070_v17 = vmul.f32 %v1066_v55, %v1054_v41  ;;  %1465 = vmatprep.subr.bf16.mxu0 %v1464_v42 }
 0x35d   :  { %1467 = vmatpush1.bf16.msra.mxu0 %v1466_v52  ;;  %v1147_v63 = vld [vmem:[#allocation2 + $0xb8] sm:$0xff]  ;;  %v1146_v38 = vld [vmem:[#allocation2 + $0xb0] sm:$0xff] }
 0x35e   :  { %1073 = vst [vmem:[#allocation2 + $0xd0] sm:$0xf] %v1069_v14  ;;  %1074 = vst [vmem:[#allocation2 + $0xd8] sm:$0xf] %v1070_v17  ;;  %v1082_v3 = vpop.permute.xlu1 %1081  ;;  %v1480_v29 = vpack.c.bf16 %v1147_v63, %v1143_v62  ;;  %v1482_v12 = vpack.c.bf16 %v1146_v38, %v1142_v37 }
 0x35f   :  { %v1088_v1 = vsel %vm618_vm7, %v1082_v3, %v1084_v0  ;;  %v1089_v2 = vsel %vm618_vm7, %v1080_v33, %v1082_v3  ;;  %v1104_v30 = vpop.permute.xlu0 %1103 }
 0x360   :  { %v1091_v50 = vmul.f32 %v1089_v2, %v1075_v11  ;;  %v1092_v5 = vmul.f32 %v1088_v1, %v1076_v49  ;;  %1481 = vmatprep.subr.bf16.mxu1 %v1480_v29 }
 0x361   :  { %1483 = vmatpush1.bf16.msra.mxu1 %v1482_v12  ;;  %v1149_v56 = vld [vmem:[#allocation2 + $0xc8] sm:$0xff]  ;;  %v1148_v27 = vld [vmem:[#allocation2 + $0xc0] sm:$0xff] }
 0x362   :  { %1095 = vst [vmem:[#allocation2 + $0xe0] sm:$0xf] %v1091_v50  ;;  %1096 = vst [vmem:[#allocation2 + $0xe8] sm:$0xf] %v1092_v5  ;;  %v1086_v39 = vpop.permute.xlu1 %1085 }
 0x363   :  { %v1087_v6 = vsel %vm618_vm7, %v1084_v0, %v1086_v39  ;;  %v1090_v9 = vsel %vm618_vm7, %v1086_v39, %v1080_v33  ;;  %v1108_v45 = vpop.permute.xlu0 %1107 }
 0x364   :  { %v1093_v10 = vmul.f32 %v1087_v6, %v1077_v18  ;;  %v1094_v13 = vmul.f32 %v1090_v9, %v1078_v40 }
 0x365   :  { %v1151_v7 = vld [vmem:[#allocation2 + $0xd8] sm:$0xff]  ;;  %v1150_v33 = vld [vmem:[#allocation2 + $0xd0] sm:$0xff] }
 0x366   :  { %1097 = vst [vmem:[#allocation2 + $0xf0] sm:$0xf] %v1093_v10  ;;  %1098 = vst [vmem:[#allocation2 + $0xf8] sm:$0xf] %v1094_v13  ;;  %v1106_v16 = vpop.permute.xlu1 %1105 }
 0x367   :  { %v1112_v59 = vsel %vm664_vm8, %v1106_v16, %v1108_v45  ;;  %v1113_v21 = vsel %vm664_vm8, %v1104_v30, %v1106_v16 }
 0x368   :  { %v1115_v22 = vmul.f32 %v1113_v21, %v1099_v20  ;;  %v1116_v58 = vmul.f32 %v1112_v59, %v1100_v15 }
 0x369   :  { %v1153_v54 = vld [vmem:[#allocation2 + $0xe8] sm:$0xff]  ;;  %v1152_v60 = vld [vmem:[#allocation2 + $0xe0] sm:$0xff] }
 0x36a   :  { %1119 = vst [vmem:[#allocation2 + $0x100] sm:$0xf] %v1115_v22  ;;  %1120 = vst [vmem:[#allocation2 + $0x108] sm:$0xf] %v1116_v58  ;;  %v1110_v57 = vpop.permute.xlu1 %1109  ;;  %v1468_v25 = vpack.c.bf16 %v1153_v54, %v1149_v56  ;;  %v1470_v46 = vpack.c.bf16 %v1152_v60, %v1148_v27 }
 0x36b   :  { %v1111_v26 = vsel %vm664_vm8, %v1108_v45, %v1110_v57  ;;  %v1114_v31 = vsel %vm664_vm8, %v1110_v57, %v1104_v30 }
 0x36c   :  { %v1117_v19 = vmul.f32 %v1111_v26, %v1101_v23  ;;  %v1118_v28 = vmul.f32 %v1114_v31, %v1102_v24  ;;  %1469 = vmatprep.subr.bf16.mxu0 %v1468_v25 }
 0x36d   :  { %1471 = vmatpush1.bf16.msra.mxu0 %v1470_v46  ;;  %v1155_v32 = vld [vmem:[#allocation2 + $0xf8] sm:$0xff]  ;;  %v1154_v34 = vld [vmem:[#allocation2 + $0xf0] sm:$0xff] }
 0x36e   :  { %1121 = vst [vmem:[#allocation2 + $0x110] sm:$0xf] %v1117_v19  ;;  %1122 = vst [vmem:[#allocation2 + $0x118] sm:$0xf] %v1118_v28  ;;  %v1484_v43 = vpack.c.bf16 %v1155_v32, %v1151_v7  ;;  %v1486_v44 = vpack.c.bf16 %v1154_v34, %v1150_v33 }
 0x370   :  { %1485 = vmatprep.subr.bf16.mxu1 %v1484_v43 }
 0x371   :  { %1487 = vmatpush1.bf16.msra.mxu1 %v1486_v44  ;;  %v1157_v4 = vld [vmem:[#allocation2 + $0x108] sm:$0xff]  ;;  %v1156_v47 = vld [vmem:[#allocation2 + $0x100] sm:$0xff] }
 0x372   :  { %1186 = vmatprep.subr.mxu0 %v1157_v4 }
 0x373   :  { %1187 = vmatpush1.msra.mxu0 %v1156_v47 }
 0x374   :  { %1350 = vmatmul.mubr.msk.f32.vlgmr.msra.gmra.mrb[4].mxu0 %vm1166_vm10, %v1123_v36  ;;  %v1164_v41 = vpop.permute.xlu0 %1163 }
 0x375   :  { %v1159_v61 = vld [vmem:[#allocation2 + $0x118] sm:$0xff]  ;;  %v1158_v8 = vld [vmem:[#allocation2 + $0x110] sm:$0xff] }
 0x376   :  { %1257 = vmatprep.subr.mxu1 %v1159_v61 }
 0x377   :  { %1258 = vmatpush1.msra.mxu1 %v1158_v8 }
 0x378   :  { %1351 = vmatmul.mubr.msk.f32.vlgmr.msra.gmra.mrb[4].mxu1 %vm1166_vm10, %v1123_v36 }
 0x447   :  { %v1236_v35 = vpop.f32.mrb[4].mxu0 }
 0x448   :  { %v1237_v48 = vadd.f32 %v1236_v35, %v1164_v41  ;;  %v1238_v51 = vpop.f32.mrb[5].mxu0 }
 0x449   :  { %v1239_v42 = vadd.f32 %v1238_v51, %v1164_v41 }
 0x44a   :  { %v1312_v52 = vmax.f32 %v1237_v48, 0.0 }
 0x44b   :  { %v1313_v53 = vmax.f32 %v1239_v42, 0.0  ;;  %v1307_v55 = vpop.f32.mrb[4].mxu1 }
 0x44c   :  { %v1308_v0 = vadd.f32 %v1307_v55, %v1164_v41  ;;  %v1309_v14 = vpop.f32.mrb[5].mxu1 }
 0x44d   :  { %v1318_v17 = vcombine.low %v1312_v52, %v1313_v53  ;;  %v1310_v11 = vadd.f32 %v1309_v14, %v1164_v41 }
 0x44e   :  { %v1314_v62 = vmax.f32 %v1308_v0, 0.0 }
 0x44f   :  { %1320 = vst [vmem:[#allocation9] sm:$0xff] %v1318_v17  ;;  %v1315_v37 = vmax.f32 %v1310_v11, 0.0 }
 0x451   :  { %v1323_v49 = vcombine.low %v1314_v62, %v1315_v37 }
 0x453   :  { %1326 = vst [vmem:[#allocation9 + $0x8] sm:$0xff] %v1323_v49 }
 0x454   :  { %1602 = shalt.err (!%p1599_p0)
}
 0x455   :  { %s1603_s1 = scalar_lea.hbm %s2285_s8, 256 }
 0x456   :  { %p1604_p1 = scmp.ne.s32.totalorder %s2285_s8, %s1603_s1  ;;  %p1607_p2 = scmp.lt.u32.totalorder %s1603_s1, %s2285_s8 }
 0x458   :  { %p1609_p3 = pnand %p1607_p2, %p1604_p1 }
 0x45a   :  { %1612 = shalt.err (!%p1609_p3)
}
 0x45b   :  { %1338 = dma.vmem_to_hbm [thread:$0]  %s1333_s17, 256, %s2285_s8, [#allocation5], %s1623_s2, %s1623_s2, %s1624_s28  }
 0x45c   :  { %1617 = dma.done.wait [#allocation5], 256  }
 0x45d   :  { %1618 = vsyncadd [#allocation5], 4294967040 }
 0x45e   :  { %1342 = vsyncpa [#allocation4], 1 }
 0x45f   :  { %1343 = vsyncpa [#allocation7], 1 }
 0x460   :  { %1344 = vsyncpa [#allocation5], 1 }

</bundles_post_ra>
